<compile_context>
chip_gen: v5e
topology: v5e:2x2
jax: 0.10.0
libtpu: 0.0.40
codegen_flags: <defaults>
</compile_context>

<pallas_src>
import jax
import jax.numpy as jnp
from jax.experimental import pallas as pl
from jax.experimental.pallas import tpu as pltpu

HOURGLASS_OUT_CH = 22   # implied by `input_depth + 22` in the refinement stages
CPAD = 128              # lane-dense padded output width (multiple of 128)


def _round_up(x, m):
    return (x + m - 1) // m * m


# ---------------------------------------------------------------------------
# Fused Pallas kernel: all stages for one row tile of x
# ---------------------------------------------------------------------------
def _make_fused_kernel(num_ref):
    """Builds the fused stacked-hourglass kernel for `num_ref` refinements.

    For a (tm, Cin) row tile of x it computes:
        h0 = x @ W0 + b0
        hd = h_{d-1} @ Wprev_d + x @ Wx_d + b_d     (== concat([prev, x]) @ W_d)
    and writes every stage lane-dense into one (num_stages, tm, CPAD) slab.
    """
    def kernel(x_ref, w0_ref, b0_ref, *rest):
        if num_ref > 0:
            wp_ref, wx_ref, br_ref, o_ref = rest
        else:
            (o_ref,) = rest

        x = x_ref[...]                                            # (tm, Cin)
        prev = jnp.dot(x, w0_ref[...],
                       preferred_element_type=jnp.float32) + b0_ref[...]
        o_ref[0] = prev
        for d in range(num_ref):                                  # static unroll
            prev = (jnp.dot(prev, wp_ref[d],
                            preferred_element_type=jnp.float32)
                    + jnp.dot(x, wx_ref[d],
                              preferred_element_type=jnp.float32)
                    + br_ref[d])
            o_ref[d + 1] = prev

    return kernel


# ---------------------------------------------------------------------------
# ModelS1 forward: one fused pallas_call + hoisted layout plumbing
# ---------------------------------------------------------------------------
def model_s1_pallas(params, x, *, tile_m=256):
    N, C, H, W = x.shape
    M = N * H * W
    num_ref = len(params["refinements"])
    num_stages = num_ref + 1

    # ---- hoisted layout change: NCHW -> (M, C), once per forward ----
    x_rows = jnp.transpose(x, (0, 2, 3, 1)).reshape(M, C).astype(jnp.float32)

    # Row tiling: tm multiple of 8; padded tail tile instead of a tm=M fallback.
    tm = min(tile_m, _round_up(M, 8))
    Mp = _round_up(M, tm)
    if Mp != M:
        x_rows = jnp.pad(x_rows, ((0, Mp - M), (0, 0)))
    grid = (Mp // tm,)

    # ---- zero-padded lane-dense parameters (Cout 22 -> CPAD) ----
    w0 = params["hourglass_0"]["w"].astype(jnp.float32)
    b0 = params["hourglass_0"]["b"].astype(jnp.float32)
    w0_p = jnp.zeros((C, CPAD), jnp.float32).at[:, :HOURGLASS_OUT_CH].set(w0)
    b0_p = jnp.zeros((1, CPAD), jnp.float32).at[0, :HOURGLASS_OUT_CH].set(b0)

    args = [x_rows, w0_p, b0_p]
    in_specs = [
        pl.BlockSpec((tm, C), lambda i: (i, 0)),          # activations tile
        pl.BlockSpec((C, CPAD), lambda i: (0, 0)),        # stage-0 weight
        pl.BlockSpec((1, CPAD), lambda i: (0, 0)),        # stage-0 bias
    ]

    if num_ref > 0:
        wp_l, wx_l, br_l = [], [], []
        for p in params["refinements"]:
            w = p["w"].astype(jnp.float32)   # (22 + C, 22): rows [prev ; x]
            b = p["b"].astype(jnp.float32)
            # Split-weight form of concat([prev, x], 1) @ W: rows 0..21 -> prev.
            wp = jnp.zeros((CPAD, CPAD), jnp.float32)
            wp = wp.at[:HOURGLASS_OUT_CH, :HOURGLASS_OUT_CH].set(
                w[:HOURGLASS_OUT_CH, :])
            wx = jnp.zeros((C, CPAD), jnp.float32).at[:, :HOURGLASS_OUT_CH].set(
                w[HOURGLASS_OUT_CH:, :])
            br = jnp.zeros((1, CPAD), jnp.float32).at[0, :HOURGLASS_OUT_CH].set(b)
            wp_l.append(wp); wx_l.append(wx); br_l.append(br)
        wp_s = jnp.stack(wp_l)               # (num_ref, CPAD, CPAD)
        wx_s = jnp.stack(wx_l)               # (num_ref, C,    CPAD)
        br_s = jnp.stack(br_l)               # (num_ref, 1,    CPAD)
        args += [wp_s, wx_s, br_s]
        in_specs += [
            pl.BlockSpec((num_ref, CPAD, CPAD), lambda i: (0, 0, 0)),
            pl.BlockSpec((num_ref, C, CPAD), lambda i: (0, 0, 0)),
            pl.BlockSpec((num_ref, 1, CPAD), lambda i: (0, 0, 0)),
        ]

    flops = 2 * Mp * (C * CPAD + num_ref * (CPAD * CPAD + C * CPAD))
    bytes_accessed = 4 * (Mp * C + C * CPAD + CPAD
                          + num_ref * (CPAD * CPAD + C * CPAD + CPAD)
                          + num_stages * Mp * CPAD)

    out_rows = pl.pallas_call(
        _make_fused_kernel(num_ref),
        out_shape=jax.ShapeDtypeStruct((num_stages, Mp, CPAD), jnp.float32),
        grid_spec=pltpu.PrefetchScalarGridSpec(
            num_scalar_prefetch=0,
            grid=grid,
            in_specs=in_specs,
            out_specs=pl.BlockSpec((num_stages, tm, CPAD), lambda i: (0, i, 0)),
        ),
        compiler_params=pltpu.CompilerParams(
            dimension_semantics=("parallel",)),
        cost_estimate=pl.CostEstimate(flops=flops, transcendentals=0,
                                      bytes_accessed=bytes_accessed),
    )(*args)

    # ---- hoisted layout change back: slab -> list of NCHW stage results ----
    out = out_rows[:, :M, :HOURGLASS_OUT_CH]
    out = out.reshape(num_stages, N, H, W, HOURGLASS_OUT_CH)
    out = jnp.transpose(out, (0, 1, 4, 2, 3))      # (stages, N, 22, H, W)
    return [out[s] for s in range(num_stages)]


model_s1_forward = jax.jit(model_s1_pallas)


# ---------------------------------------------------------------------------
# Synthetic parameters (same shapes as the unfused version) + pure-JAX reference
# ---------------------------------------------------------------------------
def init_model_s1_params(stack_depth, input_depth, key):
    params = {}
    k0, key = jax.random.split(key)
    params["hourglass_0"] = {
        "w": 0.05 * jax.random.normal(k0, (input_depth, HOURGLASS_OUT_CH),
                                      jnp.float32),
        "b": jnp.linspace(-0.1, 0.1, HOURGLASS_OUT_CH, dtype=jnp.float32),
    }
    refinements = []
    for _ in range(stack_depth - 1):
        kd, key = jax.random.split(key)
        refinements.append({
            "w": 0.05 * jax.random.normal(
                kd, (HOURGLASS_OUT_CH + input_depth, HOURGLASS_OUT_CH),
                jnp.float32),
            "b": jnp.linspace(-0.1, 0.1, HOURGLASS_OUT_CH, dtype=jnp.float32),
        })
    params["refinements"] = refinements
    return params


def model_s1_reference(params, x):
    """Plain-JAX mirror of ModelS1.forward (concat + 1x1-conv matmul)."""
    def conv1x1(xn, w, b):
        n, c, h, ww = xn.shape
        xf = jnp.transpose(xn, (0, 2, 3, 1)).reshape(-1, c)
        of = xf @ w + b
        return jnp.transpose(of.reshape(n, h, ww, -1), (0, 3, 1, 2))

    results = [conv1x1(x, params["hourglass_0"]["w"], params["hourglass_0"]["b"])]
    for p in params["refinements"]:
        h_in = jnp.concatenate([results[-1], x], axis=1)   # torch.cat([prev, x], 1)
        results.append(conv1x1(h_in, p["w"], p["b"]))
    return results


if __name__ == "__main__":
    stack_depth = 3
    input_depth = 4
    N, C, H, W = 2, input_depth, 16, 16

    key = jax.random.PRNGKey(0)
    kx, kp = jax.random.split(key)
    x = jax.random.normal(kx, (N, C, H, W), jnp.float32)
    params = init_model_s1_params(stack_depth, input_depth, kp)

    results = model_s1_forward(params, x)
    results = jax.block_until_ready(results)

    assert len(results) == stack_depth
    for r in results:
        assert r.shape == (N, HOURGLASS_OUT_CH, H, W), r.shape

    # Correctness vs. plain-JAX reference (same stand-in hourglass body).
    refs = model_s1_reference(params, x)
    for r, ref in zip(results, refs):
        assert jnp.allclose(r, ref, rtol=1e-5, atol=1e-5), \
            float(jnp.max(jnp.abs(r - ref)))

    print("KERNEL_OK")
</pallas_src>

<mosaic_0001>
module attributes {stable_mosaic.version = 11 : i64} {
  func.func @kernel(%arg0: i32, %arg1: memref<256x4xf32, #tpu.memory_space<vmem>>, %arg2: memref<4x128xf32, #tpu.memory_space<vmem>>, %arg3: memref<1x128xf32, #tpu.memory_space<vmem>>, %arg4: memref<2x128x128xf32, #tpu.memory_space<vmem>>, %arg5: memref<2x4x128xf32, #tpu.memory_space<vmem>>, %arg6: memref<2x1x128xf32, #tpu.memory_space<vmem>>, %arg7: memref<3x256x128xf32, #tpu.memory_space<vmem>>) attributes {dimension_semantics = [#tpu.dimension_semantics<parallel>], iteration_bounds = array<i64: 2>, scalar_prefetch = 0 : i64, scratch_operands = 0 : i64, tpu.core_type = #tpu.core_type<tc>, window_params = [{transform_indices = @transform_0, window_bounds = array<i64: 256, 4>}, {pipeline_mode = #tpu.pipeline_mode<synchronous>, transform_indices = @transform_1, window_bounds = array<i64: 4, 128>}, {pipeline_mode = #tpu.pipeline_mode<synchronous>, transform_indices = @transform_2, window_bounds = array<i64: 1, 128>}, {pipeline_mode = #tpu.pipeline_mode<synchronous>, transform_indices = @transform_3, window_bounds = array<i64: 2, 128, 128>}, {pipeline_mode = #tpu.pipeline_mode<synchronous>, transform_indices = @transform_4, window_bounds = array<i64: 2, 4, 128>}, {pipeline_mode = #tpu.pipeline_mode<synchronous>, transform_indices = @transform_5, window_bounds = array<i64: 2, 1, 128>}, {transform_indices = @transform_6, window_bounds = array<i64: 3, 256, 128>}]} {
    %c0 = arith.constant 0 : index
    %c0_0 = arith.constant 0 : index
    %0 = vector.load %arg1[%c0, %c0_0] : memref<256x4xf32, #tpu.memory_space<vmem>>, vector<256x4xf32>
    %c0_1 = arith.constant 0 : index
    %c0_2 = arith.constant 0 : index
    %1 = vector.load %arg2[%c0_1, %c0_2] : memref<4x128xf32, #tpu.memory_space<vmem>>, vector<4x128xf32>
    %cst = arith.constant dense<0.000000e+00> : vector<256x128xf32>
    %2 = tpu.matmul %0, %1, %cst {dimension_numbers = #tpu.dot_dimension_numbers<[1], [0], [0], [1], [0, 0, 1, 1], [], []>} : vector<256x4xf32>, vector<4x128xf32>, vector<256x128xf32> -> vector<256x128xf32>
    %c0_3 = arith.constant 0 : index
    %c0_4 = arith.constant 0 : index
    %3 = vector.load %arg3[%c0_3, %c0_4] : memref<1x128xf32, #tpu.memory_space<vmem>>, vector<1x128xf32>
    %4 = vector.broadcast %3 : vector<1x128xf32> to vector<256x128xf32>
    %5 = arith.addf %2, %4 : vector<256x128xf32>
    %c0_5 = arith.constant 0 : index
    %c0_6 = arith.constant 0 : index
    %c0_7 = arith.constant 0 : index
    %6 = vector.load %arg7[%c0_5, %c0_6, %c0_7] : memref<3x256x128xf32, #tpu.memory_space<vmem>>, vector<1x256x128xf32>
    %7 = vector.shape_cast %6 : vector<1x256x128xf32> to vector<256x128xf32>
    %8 = vector.shape_cast %5 : vector<256x128xf32> to vector<1x256x128xf32>
    tpu.vector_store %arg7[%c0_5, %c0_6, %c0_7], %8 {strides = array<i32>} : memref<3x256x128xf32, #tpu.memory_space<vmem>>, vector<1x256x128xf32>,
    %c0_8 = arith.constant 0 : index
    %c0_9 = arith.constant 0 : index
    %c0_10 = arith.constant 0 : index
    %9 = vector.load %arg4[%c0_8, %c0_9, %c0_10] : memref<2x128x128xf32, #tpu.memory_space<vmem>>, vector<1x128x128xf32>
    %10 = vector.shape_cast %9 : vector<1x128x128xf32> to vector<128x128xf32>
    %cst_11 = arith.constant dense<0.000000e+00> : vector<256x128xf32>
    %11 = tpu.matmul %5, %10, %cst_11 {dimension_numbers = #tpu.dot_dimension_numbers<[1], [0], [0], [1], [0, 0, 1, 1], [], []>} : vector<256x128xf32>, vector<128x128xf32>, vector<256x128xf32> -> vector<256x128xf32>
    %c0_12 = arith.constant 0 : index
    %c0_13 = arith.constant 0 : index
    %c0_14 = arith.constant 0 : index
    %12 = vector.load %arg5[%c0_12, %c0_13, %c0_14] : memref<2x4x128xf32, #tpu.memory_space<vmem>>, vector<1x4x128xf32>
    %13 = vector.shape_cast %12 : vector<1x4x128xf32> to vector<4x128xf32>
    %cst_15 = arith.constant dense<0.000000e+00> : vector<256x128xf32>
    %14 = tpu.matmul %0, %13, %cst_15 {dimension_numbers = #tpu.dot_dimension_numbers<[1], [0], [0], [1], [0, 0, 1, 1], [], []>} : vector<256x4xf32>, vector<4x128xf32>, vector<256x128xf32> -> vector<256x128xf32>
    %15 = arith.addf %11, %14 : vector<256x128xf32>
    %c0_16 = arith.constant 0 : index
    %c0_17 = arith.constant 0 : index
    %c0_18 = arith.constant 0 : index
    %16 = vector.load %arg6[%c0_16, %c0_17, %c0_18] : memref<2x1x128xf32, #tpu.memory_space<vmem>>, vector<1x1x128xf32>
    %17 = vector.shape_cast %16 : vector<1x1x128xf32> to vector<1x128xf32>
    %18 = vector.broadcast %17 : vector<1x128xf32> to vector<256x128xf32>
    %19 = arith.addf %15, %18 : vector<256x128xf32>
    %c1 = arith.constant 1 : index
    %c0_19 = arith.constant 0 : index
    %c0_20 = arith.constant 0 : index
    %20 = vector.load %arg7[%c1, %c0_19, %c0_20] : memref<3x256x128xf32, #tpu.memory_space<vmem>>, vector<1x256x128xf32>
    %21 = vector.shape_cast %20 : vector<1x256x128xf32> to vector<256x128xf32>
    %22 = vector.shape_cast %19 : vector<256x128xf32> to vector<1x256x128xf32>
    tpu.vector_store %arg7[%c1, %c0_19, %c0_20], %22 {strides = array<i32>} : memref<3x256x128xf32, #tpu.memory_space<vmem>>, vector<1x256x128xf32>,
    %c1_21 = arith.constant 1 : index
    %c0_22 = arith.constant 0 : index
    %c0_23 = arith.constant 0 : index
    %23 = vector.load %arg4[%c1_21, %c0_22, %c0_23] : memref<2x128x128xf32, #tpu.memory_space<vmem>>, vector<1x128x128xf32>
    %24 = vector.shape_cast %23 : vector<1x128x128xf32> to vector<128x128xf32>
    %cst_24 = arith.constant dense<0.000000e+00> : vector<256x128xf32>
    %25 = tpu.matmul %19, %24, %cst_24 {dimension_numbers = #tpu.dot_dimension_numbers<[1], [0], [0], [1], [0, 0, 1, 1], [], []>} : vector<256x128xf32>, vector<128x128xf32>, vector<256x128xf32> -> vector<256x128xf32>
    %c1_25 = arith.constant 1 : index
    %c0_26 = arith.constant 0 : index
    %c0_27 = arith.constant 0 : index
    %26 = vector.load %arg5[%c1_25, %c0_26, %c0_27] : memref<2x4x128xf32, #tpu.memory_space<vmem>>, vector<1x4x128xf32>
    %27 = vector.shape_cast %26 : vector<1x4x128xf32> to vector<4x128xf32>
    %cst_28 = arith.constant dense<0.000000e+00> : vector<256x128xf32>
    %28 = tpu.matmul %0, %27, %cst_28 {dimension_numbers = #tpu.dot_dimension_numbers<[1], [0], [0], [1], [0, 0, 1, 1], [], []>} : vector<256x4xf32>, vector<4x128xf32>, vector<256x128xf32> -> vector<256x128xf32>
    %29 = arith.addf %25, %28 : vector<256x128xf32>
    %c1_29 = arith.constant 1 : index
    %c0_30 = arith.constant 0 : index
    %c0_31 = arith.constant 0 : index
    %30 = vector.load %arg6[%c1_29, %c0_30, %c0_31] : memref<2x1x128xf32, #tpu.memory_space<vmem>>, vector<1x1x128xf32>
    %31 = vector.shape_cast %30 : vector<1x1x128xf32> to vector<1x128xf32>
    %32 = vector.broadcast %31 : vector<1x128xf32> to vector<256x128xf32>
    %33 = arith.addf %29, %32 : vector<256x128xf32>
    %c2 = arith.constant 2 : index
    %c0_32 = arith.constant 0 : index
    %c0_33 = arith.constant 0 : index
    %34 = vector.load %arg7[%c2, %c0_32, %c0_33] : memref<3x256x128xf32, #tpu.memory_space<vmem>>, vector<1x256x128xf32>
    %35 = vector.shape_cast %34 : vector<1x256x128xf32> to vector<256x128xf32>
    %36 = vector.shape_cast %33 : vector<256x128xf32> to vector<1x256x128xf32>
    tpu.vector_store %arg7[%c2, %c0_32, %c0_33], %36 {strides = array<i32>} : memref<3x256x128xf32, #tpu.memory_space<vmem>>, vector<1x256x128xf32>,
    return
  }
  func.func @transform_0(%arg0: i32) -> (i32, i32) {
    %c0_i32 = arith.constant 0 : i32
    %c0_i32_0 = arith.constant 0 : i32
    return %arg0, %c0_i32 : i32, i32
  }
  func.func @transform_1(%arg0: i32) -> (i32, i32) {
    %c0_i32 = arith.constant 0 : i32
    %c0_i32_0 = arith.constant 0 : i32
    %c0_i32_1 = arith.constant 0 : i32
    return %c0_i32, %c0_i32_0 : i32, i32
  }
  func.func @transform_2(%arg0: i32) -> (i32, i32) {
    %c0_i32 = arith.constant 0 : i32
    %c0_i32_0 = arith.constant 0 : i32
    %c0_i32_1 = arith.constant 0 : i32
    return %c0_i32, %c0_i32_0 : i32, i32
  }
  func.func @transform_3(%arg0: i32) -> (i32, i32, i32) {
    %c0_i32 = arith.constant 0 : i32
    %c0_i32_0 = arith.constant 0 : i32
    %c0_i32_1 = arith.constant 0 : i32
    %c0_i32_2 = arith.constant 0 : i32
    return %c0_i32, %c0_i32_0, %c0_i32_1 : i32, i32, i32
  }
  func.func @transform_4(%arg0: i32) -> (i32, i32, i32) {
    %c0_i32 = arith.constant 0 : i32
    %c0_i32_0 = arith.constant 0 : i32
    %c0_i32_1 = arith.constant 0 : i32
    %c0_i32_2 = arith.constant 0 : i32
    return %c0_i32, %c0_i32_0, %c0_i32_1 : i32, i32, i32
  }
  func.func @transform_5(%arg0: i32) -> (i32, i32, i32) {
    %c0_i32 = arith.constant 0 : i32
    %c0_i32_0 = arith.constant 0 : i32
    %c0_i32_1 = arith.constant 0 : i32
    %c0_i32_2 = arith.constant 0 : i32
    return %c0_i32, %c0_i32_0, %c0_i32_1 : i32, i32, i32
  }
  func.func @transform_6(%arg0: i32) -> (i32, i32, i32) {
    %c0_i32 = arith.constant 0 : i32
    %c0_i32_0 = arith.constant 0 : i32
    %c0_i32_1 = arith.constant 0 : i32
    return %c0_i32, %arg0, %c0_i32_0 : i32, i32, i32
  }
}

</mosaic_0001>

<bundles_post_ra>
// kernel: model_s1_pallas.1
= control target key start
LH: loop header
LB: loop body
LE: loop exit
PB: predicated region body
PF: predicated region fallthrough
CT: control target
= control target key end

     0   :  { %s1937_s21 = smov 0   ;;  %s1939_s22 = smov 0   ;;  %s2839_s0 = inlined_call_operand.vmem [shape: f32[512,4], index: 0, kind: input, shape index: {}]   ;;  %s2840_s1 = inlined_call_operand.vmem [shape: f32[4,128], index: 1, kind: input, shape index: {}]   ;;  %s2841_s2 = inlined_call_operand.vmem [shape: f32[1,128], index: 2, kind: input, shape index: {}]   ;;  %s2842_s3 = inlined_call_operand.vmem [shape: f32[2,128,128], index: 3, kind: input, shape index: {}]   ;;  %s2843_s4 = inlined_call_operand.vmem [shape: f32[2,4,128], index: 4, kind: input, shape index: {}]   ;;  %s2844_s5 = inlined_call_operand.vmem [shape: f32[2,1,128], index: 5, kind: input, shape index: {}]   ;;  %s2845_s6 = inlined_call_operand.vmem [shape: f32[3,512,128], index: 6, kind: output, shape index: {}]  }
   0x1   :  { %s1941_s23 = smov 0  }
   0x2 LB: > { %s1950_s24 = sadd.s32 4294967295, %s1900_s23   ;;  %s1952_s25 = sadd.s32 1, %s1900_s23   ;;  %s1900_s23 = sphi %s1941_s23, %s2849_s23   ;;  %s1896_s22 = sphi %s1939_s22, %s2848_s22   ;;  %s1892_s21 = sphi %s1937_s21, %s2847_s21  }
   0x3   : > { %s151_s26 = ssub.s32 %s1900_s23, %s1952_s25  ;;  %s154_s27 = sadd.s32 1, %s1896_s22 }
   0x4   : > { %p152_p0 = scmp.eq.s32.totalorder %s151_s26, 0  ;;  %p164_p1 = scmp.ne.s32.totalorder %s1896_s22, %s1892_s21 }
   0x5   : > { %p165_p2 = scmp.eq.s32.totalorder %s1950_s24, 1  ;;  %p1642_p3 = scmp.ge.s32.totalorder %s1900_s23, 1 }
   0x6   : > { %s1960_s28 = scalar_select %p152_p0, %s1896_s22, %s154_s27  }
   0x7   : > { %p1962_p4 = por %p165_p2, %p164_p1  ;;  %p213_p5 = scmp.lt.s32.totalorder %s1900_s23, 3 }
   0x9   : > { %p214_p6 = pnand %p1642_p3, %p213_p5 }
   0xa   : > { %s1643_s8 = sshll.u32 (!%p214_p6), %s1950_s24, 5  ;;  %s239_s13 = sand.u32 (!%p214_p6), 1, %s1892_s21  }
   0xb   : > { %217 = sbr.rel (%p214_p6) target bundleno = 677 (0x2a5), region = 44  ;;  %p243_p7 = scmp.lt.s32.totalorder (!%p214_p6), %s1643_s8, 63 }
   0xc   : > { %s1850_s14 = smul.u32 (!%p214_p6), 768, %s239_s13 }
   0xe   : > { %s2166_s17 = scalar_lea.vmem (!%p214_p6), [#allocation2], %s1850_s14 }
  0x10   : > { %v281_v0 = vld [vmem:[%s2840_s1] sm:$0xf]  ;;  %vm383_vm0 = vcmask 1043456   ;;  %s2851_s8 = smov (!%p243_p7, %s1643_s8), 63  ;;  %vm286_vm1 = vcmask 31744   ;;  %v547_v10 = vld [vmem:[%s2842_s3 + $0x78] sm:$0xff] }
  0x11   : > { %1645 = vmatpush.msk.msra.mxu0 %vm383_vm0, %v281_v0  ;;  %1831 = vmatpush.msk.msra.mxu1 %vm383_vm0, %v281_v0  ;;  %s1644_s9 = sshll.u32 %s2851_s8, 3  ;;  %v548_v6 = vld [vmem:[%s2843_s4] sm:$0xf]  ;;  %v546_v11 = vld [vmem:[%s2842_s3 + $0x70] sm:$0xff]  ;;  %v545_v12 = vld [vmem:[%s2842_s3 + $0x68] sm:$0xff]  ;;  %s1830_s20 = sshll.u32 (%p1962_p4), %s1950_s24, 8 }
  0x12   : > { %1832 = vmatpush.msk.msra.mxu2 %vm383_vm0, %v281_v0  ;;  %1833 = vmatpush.msk.msra.mxu3 %vm383_vm0, %v281_v0  ;;  %s1977_s12 = scalar_lea.vmem %s2839_s0, %s1644_s9  ;;  %v544_v14 = vld [vmem:[%s2842_s3 + $0x60] sm:$0xff]  ;;  %v543_v17 = vld [vmem:[%s2842_s3 + $0x58] sm:$0xff]  ;;  %v542_v18 = vld [vmem:[%s2842_s3 + $0x50] sm:$0xff]  ;;  %s2637_s26 = scalar_lea.vmem (%p1962_p4), %s2845_s6, %s1830_s20 }
  0x13   : > { %v1980_v1 = vld [vmem:[%s1977_s12] sm:$0xff]  ;;  %v1985_v2 = vld [vmem:[%s1977_s12 + $0x8] sm:$0xff]  ;;  %v1990_v3 = vld [vmem:[%s1977_s12 + $0x10] sm:$0xff]  ;;  %1678 = vmatpush.msk.msrb.mxu1 %vm383_vm0, %v548_v6 }
  0x14   : > { %1646 = vmatmul.msk.f32.vlgmr.msra.gmra.mxu0 %vm286_vm1, %v1980_v1  ;;  %v1995_v4 = vld [vmem:[%s1977_s12 + $0x18] sm:$0xff]  ;;  %v2000_v5 = vld [vmem:[%s1977_s12 + $0x48] sm:$0xff]  ;;  %v2009_v7 = vld [vmem:[%s1977_s12 + $0x20] sm:$0xff]  ;;  %665 = vmatpush.msrb.mxu2 %v547_v10 }
  0x15   : > { %1655 = vmatmul.msk.f32.vlgmr.msra.gmra.mxu1 %vm286_vm1, %v2000_v5  ;;  %v2014_v8 = vld [vmem:[%s1977_s12 + $0x50] sm:$0xff]  ;;  %v2033_v13 = vld [vmem:[%s1977_s12 + $0x28] sm:$0xff]  ;;  %v2039_v15 = vld [vmem:[%s1977_s12 + $0x58] sm:$0xff] }
  0x16   : > { %v2017_v9 = vld [vmem:[%s1977_s12 + $0x90] sm:$0xff]  ;;  %666 = vmatpush.msrb.mxu2 %v546_v11  ;;  %v2042_v16 = vld [vmem:[%s1977_s12 + $0x98] sm:$0xff]  ;;  %v541_v19 = vld [vmem:[%s2842_s3 + $0x48] sm:$0xff] }
  0x17   : > { %1664 = vmatmul.msk.f32.vlgmr.msra.gmra.mxu2 %vm286_vm1, %v2017_v9  ;;  %v2060_v20 = vld [vmem:[%s1977_s12 + $0x30] sm:$0xff]  ;;  %v540_v21 = vld [vmem:[%s2842_s3 + $0x40] sm:$0xff]  ;;  %v539_v24 = vld [vmem:[%s2842_s3 + $0x38] sm:$0xff] }
  0x18   : > { %667 = vmatpush.msrb.mxu2 %v545_v12  ;;  %v2066_v22 = vld [vmem:[%s1977_s12 + $0x60] sm:$0xff]  ;;  %v538_v25 = vld [vmem:[%s2842_s3 + $0x30] sm:$0xff]  ;;  %v537_v26 = vld [vmem:[%s2842_s3 + $0x28] sm:$0xff] }
  0x19   : > { %v2069_v23 = vld [vmem:[%s1977_s12 + $0xa0] sm:$0xff]  ;;  %v2087_v27 = vld [vmem:[%s1977_s12 + $0x38] sm:$0xff]  ;;  %v2093_v29 = vld [vmem:[%s1977_s12 + $0x68] sm:$0xff] }
  0x1a   : > { %668 = vmatpush.msrb.mxu2 %v544_v14  ;;  %v536_v28 = vld [vmem:[%s2842_s3 + $0x20] sm:$0xff]  ;;  %v2096_v30 = vld [vmem:[%s1977_s12 + $0xa8] sm:$0xff]  ;;  %v535_v31 = vld [vmem:[%s2842_s3 + $0x18] sm:$0xff] }
  0x1b   : > { %v534_v32 = vld [vmem:[%s2842_s3 + $0x10] sm:$0xff]  ;;  %v533_v33 = vld [vmem:[%s2842_s3 + $0x8] sm:$0xff]  ;;  %v2114_v34 = vld [vmem:[%s1977_s12 + $0x40] sm:$0xff] }
  0x1c   : > { %1647 = vmatmul.msk.f32.gmra.mxu0 %vm286_vm1, %v1985_v2  ;;  %669 = vmatpush.msrb.mxu2 %v543_v17  ;;  %v2117_v35 = vld [vmem:[%s1977_s12 + $0x70] sm:$0xff]  ;;  %v2129_v37 = vld [vmem:[%s1977_s12 + $0x78] sm:$0xff]  ;;  %v2139_v39 = vld [vmem:[%s1977_s12 + $0x80] sm:$0xff] }
  0x1d   : > { %1656 = vmatmul.msk.f32.gmra.mxu1 %vm286_vm1, %v2014_v8  ;;  %v2120_v36 = vld [vmem:[%s1977_s12 + $0xb0] sm:$0xff]  ;;  %v2132_v38 = vld [vmem:[%s1977_s12 + $0xb8] sm:$0xff]  ;;  %v2144_v40 = vld [vmem:[%s1977_s12 + $0x88] sm:$0xff] }
  0x1e   : > { %670 = vmatpush.msrb.mxu2 %v542_v18  ;;  %v532_v41 = vld [vmem:[%s2842_s3] sm:$0xff]  ;;  %v2196_v56 = vld [vmem:[%s1977_s12 + $0xc8] sm:$0xff]  ;;  %v2213_v62 = vld [vmem:[%s1977_s12 + $0xd0] sm:$0xff] }
  0x1f   : > { %1665 = vmatmul.msk.f32.gmra.mxu2 %vm286_vm1, %v2042_v16  ;;  %v2161_v42 = vld [vmem:[%s2841_s2] ss:$0 sm:$0xff]  ;;  %v1759_v61 = vld [vmem:[%s2843_s4 + $0x4] sm:$0xf]  ;;  %v1758_v0 = vld [vmem:[%s2842_s3 + $0xf8] sm:$0xff] }
  0x20   : > { %671 = vmatpush.msrb.mxu2 %v541_v19  ;;  %v2182_v51 = vld [vmem:[%s1977_s12 + $0xc0] sm:$0xff]  ;;  %1760 = vmatpush.msk.msrb.mxu3 %vm383_vm0, %v1759_v61  ;;  %v2231_v12 = vld [vmem:[%s1977_s12 + $0xd8] sm:$0xff]  ;;  %v1757_v18 = vld [vmem:[%s2842_s3 + $0xf0] sm:$0xff] }
  0x21   : > { %1670 = vmatmul.msk.f32.vlgmr.msra.gmra.mxu3 %vm286_vm1, %v2182_v51  ;;  %982 = vmatpush.msrb.mxu0 %v1758_v0  ;;  %v1756_v19 = vld [vmem:[%s2842_s3 + $0xe8] sm:$0xff]  ;;  %v1751_v61 = vld [vmem:[%s2842_s3 + $0xc0] sm:$0xff] }
  0x22   : > { %672 = vmatpush.msrb.mxu2 %v540_v21 }
  0x23   : > { %983 = vmatpush.msrb.mxu0 %v1757_v18 }
  0x24   : > { %1648 = vmatmul.msk.f32.gmra.mxu0 %vm286_vm1, %v1990_v3  ;;  %673 = vmatpush.msrb.mxu2 %v539_v24 }
  0x25   : > { %1657 = vmatmul.msk.f32.gmra.mxu1 %vm286_vm1, %v2039_v15  ;;  %984 = vmatpush.msrb.mxu0 %v1756_v19 }
  0x26   : > { %674 = vmatpush.msrb.mxu2 %v538_v25 }
  0x27   : > { %1666 = vmatmul.msk.f32.gmra.mxu2 %vm286_vm1, %v2069_v23 }
  0x28   : > { %675 = vmatpush.msrb.mxu2 %v537_v26 }
  0x29   : > { %1671 = vmatmul.msk.f32.gmra.mxu3 %vm286_vm1, %v2196_v56 }
  0x2a   : > { %676 = vmatpush.msrb.mxu2 %v536_v28  ;;  %v2256_v28 = vld [vmem:[%s1977_s12 + $0xe0] sm:$0xff] }
  0x2c   : > { %1649 = vmatmul.msk.f32.gmra.mxu0 %vm286_vm1, %v1995_v4  ;;  %677 = vmatpush.msrb.mxu2 %v535_v31 }
  0x2d   : > { %1658 = vmatmul.msk.f32.gmra.mxu1 %vm286_vm1, %v2066_v22 }
  0x2e   : > { %678 = vmatpush.msrb.mxu2 %v534_v32 }
  0x2f   : > { %1667 = vmatmul.msk.f32.gmra.mxu2 %vm286_vm1, %v2096_v30 }
  0x30   : > { %679 = vmatpush.msrb.mxu2 %v533_v33  ;;  %v1755_v33 = vld [vmem:[%s2842_s3 + $0xe0] sm:$0xff] }
  0x31   : > { %1672 = vmatmul.msk.f32.gmra.mxu3 %vm286_vm1, %v2213_v62  ;;  %985 = vmatpush.msrb.mxu0 %v1755_v33 }
  0x32   : > { %680 = vmatpush.msrb.mxu2 %v532_v41 }
  0x34   : > { %1650 = vmatmul.msk.f32.gmra.mxu0 %vm286_vm1, %v2009_v7  ;;  %1834 = vmatpush.msra.mxu2 %v1758_v0  ;;  %v2323_v0 = vld [vmem:[%s1977_s12 + $0xf8] sm:$0xff] }
  0x35   : > { %1659 = vmatmul.msk.f32.gmra.mxu1 %vm286_vm1, %v2093_v29 }
  0x36   : > { %1835 = vmatpush.msra.mxu2 %v1757_v18 }
  0x37   : > { %1668 = vmatmul.msk.f32.gmra.mxu2 %vm286_vm1, %v2120_v36 }
  0x38   : > { %1836 = vmatpush.msra.mxu2 %v1756_v19 }
  0x39   : > { %1673 = vmatmul.msk.f32.gmra.mxu3 %vm286_vm1, %v2231_v12 }
  0x3a   : > { %1837 = vmatpush.msra.mxu2 %v1755_v33  ;;  %v1746_v33 = vld [vmem:[%s2842_s3 + $0x98] sm:$0xff] }
  0x3c   : > { %1651 = vmatmul.msk.f32.gmra.mxu0 %vm286_vm1, %v2033_v13 }
  0x3d   : > { %1660 = vmatmul.msk.f32.gmra.mxu1 %vm286_vm1, %v2117_v35 }
  0x3f   : > { %1669 = vmatmul.msk.f32.gmra.mxu2 %vm286_vm1, %v2132_v38 }
  0x41   : > { %1674 = vmatmul.msk.f32.gmra.mxu3 %vm286_vm1, %v2256_v28 }
  0x44   : > { %1652 = vmatmul.msk.f32.gmra.mxu0 %vm286_vm1, %v2060_v20 }
  0x45   : > { %1661 = vmatmul.msk.f32.gmra.mxu1 %vm286_vm1, %v2129_v37 }
  0x4c   : > { %1653 = vmatmul.msk.f32.gmra.mxu0 %vm286_vm1, %v2087_v27 }
  0x4d   : > { %1662 = vmatmul.msk.f32.gmra.mxu1 %vm286_vm1, %v2139_v39 }
  0x54   : > { %1654 = vmatmul.msk.f32.gmra.mxu0 %vm286_vm1, %v2114_v34 }
  0x55   : > { %1663 = vmatmul.msk.f32.gmra.mxu1 %vm286_vm1, %v2144_v40 }
  0x5d   : > { %1679 = vmatmul.msk.f32.vlgmr.msrb.gmra.mxu1 %vm286_vm1, %v1980_v1 }
  0x65   : > { %1680 = vmatmul.msk.f32.gmra.mxu1 %vm286_vm1, %v1985_v2 }
  0x6d   : > { %1681 = vmatmul.msk.f32.gmra.mxu1 %vm286_vm1, %v1990_v3 }
  0x75   : > { %1682 = vmatmul.msk.f32.gmra.mxu1 %vm286_vm1, %v1995_v4 }
  0x7d   : > { %1683 = vmatmul.msk.f32.gmra.mxu1 %vm286_vm1, %v2009_v7 }
  0x85   : > { %1684 = vmatmul.msk.f32.gmra.mxu1 %vm286_vm1, %v2033_v13 }
  0x8d   : > { %1685 = vmatmul.msk.f32.gmra.mxu1 %vm286_vm1, %v2060_v20 }
  0x91   : > { %v404_v43 = vpop.f32.mrf.mxu0 }
  0x92   : > { %v405_v44 = vadd.f32 %v2161_v42, %v404_v43  ;;  %v431_v52 = vpop.f32.mrf.mxu1 }
  0x93   : > { %v2187_v53 = vadd.f32 %v2161_v42, %v431_v52 }
  0x94   : > { %500 = vst [vmem:[%s2166_s17] sm:$0xff] %v405_v44  ;;  %681 = vmatmul.f32.vlgmr.msrb.gmra.mxu2 %v405_v44 }
  0x95   : > { %1686 = vmatmul.msk.f32.gmra.mxu1 %vm286_vm1, %v2087_v27  ;;  %509 = vst [vmem:[%s2166_s17 + $0x48] sm:$0xff] %v2187_v53 }
  0x99   : > { %v407_v45 = vpop.f32.mrf.mxu0 }
  0x9a   : > { %v408_v46 = vadd.f32 %v2161_v42, %v407_v45  ;;  %v434_v57 = vpop.f32.mrf.mxu1  ;;  %v458_v17 = vpop.f32.mrf.mxu2 }
  0x9b   : > { %v2201_v58 = vadd.f32 %v2161_v42, %v434_v57  ;;  %v2240_v21 = vadd.f32 %v2161_v42, %v458_v17  ;;  %v2305_v57 = vld [vmem:[%s1977_s12 + $0xf0] sm:$0xff] }
  0x9c   : > { %501 = vst [vmem:[%s2166_s17 + $0x8] sm:$0xff] %v408_v46  ;;  %684 = vmatmul.f32.gmra.mxu2 %v408_v46  ;;  %v1754_v46 = vld [vmem:[%s2842_s3 + $0xd8] sm:$0xff] }
  0x9d   : > { %1687 = vmatmul.msk.f32.gmra.mxu1 %vm286_vm1, %v2114_v34  ;;  %510 = vst [vmem:[%s2166_s17 + $0x50] sm:$0xff] %v2201_v58  ;;  %986 = vmatpush.msrb.mxu0 %v1754_v46 }
  0x9e   : > { %518 = vst [vmem:[%s2166_s17 + $0x90] sm:$0xff] %v2240_v21  ;;  %1838 = vmatpush.msra.mxu2 %v1754_v46 }
  0xa1   : > { %v410_v47 = vpop.f32.mrf.mxu0 }
  0xa2   : > { %v411_v48 = vadd.f32 %v2161_v42, %v410_v47  ;;  %v437_v63 = vpop.f32.mrf.mxu1  ;;  %v461_v32 = vpop.f32.mrf.mxu2  ;;  %v2281_v47 = vld [vmem:[%s1977_s12 + $0xe8] sm:$0xff] }
  0xa3   : > { %v2222_v6 = vadd.f32 %v2161_v42, %v437_v63  ;;  %v2262_v41 = vadd.f32 %v2161_v42, %v461_v32  ;;  %1675 = vmatmul.msk.f32.gmra.mxu3 %vm286_vm1, %v2281_v47 }
  0xa4   : > { %502 = vst [vmem:[%s2166_s17 + $0x10] sm:$0xff] %v411_v48  ;;  %687 = vmatmul.f32.gmra.mxu2 %v411_v48 }
  0xa5   : > { %1688 = vmatmul.msk.f32.gmra.mxu1 %vm286_vm1, %v2000_v5  ;;  %511 = vst [vmem:[%s2166_s17 + $0x58] sm:$0xff] %v2222_v6 }
  0xa6   : > { %519 = vst [vmem:[%s2166_s17 + $0x98] sm:$0xff] %v2262_v41 }
  0xa9   : > { %v413_v49 = vpop.f32.mrf.mxu0 }
  0xaa   : > { %v414_v50 = vadd.f32 %v2161_v42, %v413_v49  ;;  %v440_v14 = vpop.f32.mrf.mxu1  ;;  %v464_v49 = vpop.f32.mrf.mxu2 }
  0xab   : > { %v2247_v24 = vadd.f32 %v2161_v42, %v440_v14  ;;  %v2287_v52 = vadd.f32 %v2161_v42, %v464_v49  ;;  %1676 = vmatmul.msk.f32.gmra.mxu3 %vm286_vm1, %v2305_v57  ;;  %v1749_v14 = vld [vmem:[%s2842_s3 + $0xb0] sm:$0xff] }
  0xac   : > { %503 = vst [vmem:[%s2166_s17 + $0x18] sm:$0xff] %v414_v50  ;;  %690 = vmatmul.f32.gmra.mxu2 %v414_v50  ;;  %v1753_v50 = vld [vmem:[%s2842_s3 + $0xd0] sm:$0xff] }
  0xad   : > { %1689 = vmatmul.msk.f32.gmra.mxu1 %vm286_vm1, %v2014_v8  ;;  %512 = vst [vmem:[%s2166_s17 + $0x60] sm:$0xff] %v2247_v24  ;;  %987 = vmatpush.msrb.mxu0 %v1753_v50 }
  0xae   : > { %520 = vst [vmem:[%s2166_s17 + $0xa0] sm:$0xff] %v2287_v52  ;;  %1839 = vmatpush.msra.mxu2 %v1753_v50 }
  0xb1   : > { %v416_v54 = vpop.f32.mrf.mxu0 }
  0xb2   : > { %v417_v55 = vadd.f32 %v2161_v42, %v416_v54  ;;  %v443_v31 = vpop.f32.mrf.mxu1 }
  0xb3   : > { %v2269_v43 = vadd.f32 %v2161_v42, %v443_v31  ;;  %1677 = vmatmul.msk.f32.gmra.mxu3 %vm286_vm1, %v2323_v0 }
  0xb4   : > { %504 = vst [vmem:[%s2166_s17 + $0x20] sm:$0xff] %v417_v55  ;;  %693 = vmatmul.f32.gmra.mxu2 %v417_v55  ;;  %v1752_v55 = vld [vmem:[%s2842_s3 + $0xc8] sm:$0xff] }
  0xb5   : > { %1690 = vmatmul.msk.f32.gmra.mxu1 %vm286_vm1, %v2039_v15  ;;  %513 = vst [vmem:[%s2166_s17 + $0x68] sm:$0xff] %v2269_v43  ;;  %988 = vmatpush.msrb.mxu0 %v1752_v55 }
  0xb6   : > { %1840 = vmatpush.msra.mxu2 %v1752_v55 }
  0xb7   : > { %989 = vmatpush.msrb.mxu0 %v1751_v61 }
  0xb8   : > { %1841 = vmatpush.msra.mxu2 %v1751_v61 }
  0xb9   : > { %v419_v59 = vpop.f32.mrf.mxu0 }
  0xba   : > { %v420_v60 = vadd.f32 %v2161_v42, %v419_v59  ;;  %v446_v48 = vpop.f32.mrf.mxu1 }
  0xbb   : > { %v2294_v54 = vadd.f32 %v2161_v42, %v446_v48  ;;  %1761 = vmatmul.msk.f32.vlgmr.msrb.gmra.mxu3 %vm286_vm1, %v1980_v1  ;;  %v1745_v1 = vld [vmem:[%s2842_s3 + $0x90] sm:$0xff] }
  0xbc   : > { %505 = vst [vmem:[%s2166_s17 + $0x28] sm:$0xff] %v420_v60  ;;  %696 = vmatmul.f32.gmra.mxu2 %v420_v60  ;;  %v467_v60 = vpop.f32.mrf.mxu2 }
  0xbd   : > { %1691 = vmatmul.msk.f32.gmra.mxu1 %vm286_vm1, %v2066_v22  ;;  %514 = vst [vmem:[%s2166_s17 + $0x70] sm:$0xff] %v2294_v54  ;;  %v2311_v63 = vadd.f32 %v2161_v42, %v467_v60 }
  0xbf   : > { %521 = vst [vmem:[%s2166_s17 + $0xa8] sm:$0xff] %v2311_v63 }
  0xc1   : > { %v422_v10 = vpop.f32.mrf.mxu0 }
  0xc2   : > { %v423_v11 = vadd.f32 %v2161_v42, %v422_v10  ;;  %v449_v59 = vpop.f32.mrf.mxu1  ;;  %v1750_v10 = vld [vmem:[%s2842_s3 + $0xb8] sm:$0xff] }
  0xc3   : > { %990 = vmatpush.msrb.mxu0 %v1750_v10  ;;  %1842 = vmatpush.msra.mxu2 %v1750_v10  ;;  %v476_v10 = vpop.f32.mrf.mxu3 }
  0xc4   : > { %506 = vst [vmem:[%s2166_s17 + $0x30] sm:$0xff] %v423_v11  ;;  %699 = vmatmul.f32.gmra.mxu2 %v423_v11  ;;  %v470_v11 = vpop.f32.mrf.mxu2  ;;  %1762 = vmatmul.msk.f32.gmra.mxu3 %vm286_vm1, %v1985_v2 }
  0xc5   : > { %1692 = vmatmul.msk.f32.gmra.mxu1 %vm286_vm1, %v2093_v29  ;;  %v2332_v18 = vadd.f32 %v2161_v42, %v470_v11  ;;  %991 = vmatpush.msrb.mxu0 %v1749_v14  ;;  %v477_v11 = vadd.f32 %v2161_v42, %v476_v10 }
  0xc6   : > { %1843 = vmatpush.msra.mxu2 %v1749_v14 }
  0xc7   : > { %522 = vst [vmem:[%s2166_s17 + $0xb0] sm:$0xff] %v2332_v18 }
  0xc8   : > { %524 = vst [vmem:[%s2166_s17 + $0xc0] sm:$0xff] %v477_v11 }
  0xc9   : > { %v425_v25 = vpop.f32.mrf.mxu0 }
  0xca   : > { %v426_v26 = vadd.f32 %v2161_v42, %v425_v25  ;;  %v452_v17 = vpop.f32.mrf.mxu1  ;;  %v1748_v25 = vld [vmem:[%s2842_s3 + $0xa8] sm:$0xff] }
  0xcb   : > { %992 = vmatpush.msrb.mxu0 %v1748_v25  ;;  %1844 = vmatpush.msra.mxu2 %v1748_v25 }
  0xcc   : > { %507 = vst [vmem:[%s2166_s17 + $0x38] sm:$0xff] %v426_v26  ;;  %702 = vmatmul.f32.gmra.mxu2 %v426_v26  ;;  %v473_v19 = vpop.f32.mrf.mxu2  ;;  %v1747_v26 = vld [vmem:[%s2842_s3 + $0xa0] sm:$0xff]  ;;  %1763 = vmatmul.msk.f32.gmra.mxu3 %vm286_vm1, %v1990_v3 }
  0xcd   : > { %1693 = vmatmul.msk.f32.gmra.mxu1 %vm286_vm1, %v2117_v35  ;;  %v2350_v31 = vadd.f32 %v2161_v42, %v473_v19  ;;  %993 = vmatpush.msrb.mxu0 %v1747_v26  ;;  %v2394_v3 = vld [vmem:[%s2844_s5] ss:$0 sm:$0xff] }
  0xce   : > { %1845 = vmatpush.msra.mxu2 %v1747_v26 }
  0xcf   : > { %523 = vst [vmem:[%s2166_s17 + $0xb8] sm:$0xff] %v2350_v31  ;;  %994 = vmatpush.msrb.mxu0 %v1746_v33 }
  0xd0   : > { %1846 = vmatpush.msra.mxu2 %v1746_v33 }
  0xd1   : > { %v428_v44 = vpop.f32.mrf.mxu0  ;;  %995 = vmatpush.msrb.mxu0 %v1745_v1 }
  0xd2   : > { %v429_v45 = vadd.f32 %v2161_v42, %v428_v44  ;;  %v455_v32 = vpop.f32.mrf.mxu1  ;;  %1847 = vmatpush.msra.mxu2 %v1745_v1 }
  0xd4   : > { %508 = vst [vmem:[%s2166_s17 + $0x40] sm:$0xff] %v429_v45  ;;  %705 = vmatmul.f32.gmra.mxu2 %v429_v45  ;;  %v1743_v45 = vld [vmem:[%s2842_s3 + $0x80] sm:$0xff]  ;;  %1764 = vmatmul.msk.f32.gmra.mxu3 %vm286_vm1, %v1995_v4 }
  0xd5   : > { %1694 = vmatmul.msk.f32.gmra.mxu1 %vm286_vm1, %v2129_v37 }
  0xda   : > { %v569_v44 = vpop.f32.mrf.mxu1 }
  0xdc   : > { %708 = vmatmul.f32.gmra.mxu2 %v2187_v53  ;;  %v450_v53 = vadd.f32 %v2161_v42, %v449_v59  ;;  %1765 = vmatmul.msk.f32.gmra.mxu3 %vm286_vm1, %v2009_v7 }
  0xdd   : > { %1695 = vmatmul.msk.f32.gmra.mxu1 %vm286_vm1, %v2139_v39 }
  0xde   : > { %515 = vst [vmem:[%s2166_s17 + $0x78] sm:$0xff] %v450_v53 }
  0xe2   : > { %v572_v2 = vpop.f32.mrf.mxu1 }
  0xe4   : > { %711 = vmatmul.f32.gmra.mxu2 %v2201_v58  ;;  %v453_v58 = vadd.f32 %v2161_v42, %v452_v17  ;;  %1766 = vmatmul.msk.f32.gmra.mxu3 %vm286_vm1, %v2033_v13 }
  0xe5   : > { %1696 = vmatmul.msk.f32.gmra.mxu1 %vm286_vm1, %v2144_v40 }
  0xe6   : > { %516 = vst [vmem:[%s2166_s17 + $0x80] sm:$0xff] %v453_v58 }
  0xea   : > { %v575_v46 = vpop.f32.mrf.mxu1 }
  0xec   : > { %714 = vmatmul.f32.gmra.mxu2 %v2222_v6  ;;  %v456_v6 = vadd.f32 %v2161_v42, %v455_v32  ;;  %1767 = vmatmul.msk.f32.gmra.mxu3 %vm286_vm1, %v2060_v20 }
  0xed   : > { %1697 = vmatmul.msk.f32.gmra.mxu1 %vm286_vm1, %v2017_v9 }
  0xee   : > { %517 = vst [vmem:[%s2166_s17 + $0x88] sm:$0xff] %v456_v6 }
  0xf4   : > { %717 = vmatmul.f32.gmra.mxu2 %v2247_v24  ;;  %v1744_v24 = vld [vmem:[%s2842_s3 + $0x88] sm:$0xff]  ;;  %1768 = vmatmul.msk.f32.gmra.mxu3 %vm286_vm1, %v2087_v27 }
  0xf5   : > { %996 = vmatpush.msrb.mxu0 %v1744_v24  ;;  %1848 = vmatpush.msra.mxu2 %v1744_v24 }
  0xf6   : > { %1698 = vmatmul.msk.f32.gmra.mxu1 %vm286_vm1, %v2042_v16 }
  0xf7   : > { %997 = vmatpush.msrb.mxu0 %v1743_v45  ;;  %1849 = vmatpush.msra.mxu2 %v1743_v45 }
  0xfc   : > { %720 = vmatmul.f32.gmra.mxu2 %v2269_v43  ;;  %v578_v43 = vpop.f32.mrf.mxu1  ;;  %1769 = vmatmul.msk.f32.gmra.mxu3 %vm286_vm1, %v2114_v34 }
  0xfe   : > { %1699 = vmatmul.msk.f32.gmra.mxu1 %vm286_vm1, %v2069_v23 }
 0x104   : > { %723 = vmatmul.f32.gmra.mxu2 %v2294_v54  ;;  %v581_v48 = vpop.f32.mrf.mxu1  ;;  %1770 = vmatmul.msk.f32.gmra.mxu3 %vm286_vm1, %v2000_v5 }
 0x106   : > { %1700 = vmatmul.msk.f32.gmra.mxu1 %vm286_vm1, %v2096_v30 }
 0x10c   : > { %726 = vmatmul.f32.gmra.mxu2 %v450_v53  ;;  %v584_v54 = vpop.f32.mrf.mxu1  ;;  %1771 = vmatmul.msk.f32.gmra.mxu3 %vm286_vm1, %v2014_v8 }
 0x10e   : > { %1701 = vmatmul.msk.f32.gmra.mxu1 %vm286_vm1, %v2120_v36 }
 0x114   : > { %729 = vmatmul.f32.gmra.mxu2 %v453_v58  ;;  %v587_v60 = vpop.f32.mrf.mxu1  ;;  %v479_v58 = vpop.f32.mrf.mxu3  ;;  %1772 = vmatmul.msk.f32.gmra.mxu3 %vm286_vm1, %v2039_v15 }
 0x115   : > { %v480_v19 = vadd.f32 %v2161_v42, %v479_v58 }
 0x116   : > { %1702 = vmatmul.msk.f32.gmra.mxu1 %vm286_vm1, %v2132_v38 }
 0x117   : > { %v682_v4 = vpop.f32.mrf.mxu2  ;;  %525 = vst [vmem:[%s2166_s17 + $0xc8] sm:$0xff] %v480_v19 }
 0x118   : > { %v683_v49 = vadd.f32 %v682_v4, %v569_v44 }
 0x11a   : > { %v782_v50 = vadd.f32 %v2394_v3, %v683_v49 }
 0x11c   : > { %1711 = vst [vmem:[%s2166_s17 + $0x100] sm:$0xff] %v782_v50  ;;  %732 = vmatmul.f32.gmra.mxu2 %v456_v6  ;;  %998 = vmatmul.f32.vlgmr.msrb.gmra.mxu0 %v782_v50  ;;  %v590_v53 = vpop.f32.mrf.mxu1  ;;  %v482_v32 = vpop.f32.mrf.mxu3 }
 0x11d   : > { %v483_v33 = vadd.f32 %v2161_v42, %v482_v32  ;;  %1773 = vmatmul.msk.f32.gmra.mxu3 %vm286_vm1, %v2066_v22 }
 0x11e   : > { %1703 = vmatmul.msk.f32.gmra.mxu1 %vm286_vm1, %v2182_v51 }
 0x11f   : > { %v685_v7 = vpop.f32.mrf.mxu2  ;;  %526 = vst [vmem:[%s2166_s17 + $0xd0] sm:$0xff] %v483_v33 }
 0x120   : > { %v686_v55 = vadd.f32 %v685_v7, %v572_v2 }
 0x122   : > { %v783_v13 = vadd.f32 %v2394_v3, %v686_v55 }
 0x124   : > { %735 = vmatmul.f32.gmra.mxu2 %v2240_v21  ;;  %1712 = vst [vmem:[%s2166_s17 + $0x108] sm:$0xff] %v783_v13  ;;  %1001 = vmatmul.f32.gmra.mxu0 %v783_v13  ;;  %v485_v44 = vpop.f32.mrf.mxu3 }
 0x125   : > { %v486_v45 = vadd.f32 %v2161_v42, %v485_v44  ;;  %1774 = vmatmul.msk.f32.gmra.mxu3 %vm286_vm1, %v2093_v29 }
 0x126   : > { %1704 = vmatmul.msk.f32.gmra.mxu1 %vm286_vm1, %v2196_v56 }
 0x127   : > { %v688_v59 = vpop.f32.mrf.mxu2  ;;  %527 = vst [vmem:[%s2166_s17 + $0xd8] sm:$0xff] %v486_v45 }
 0x128   : > { %v689_v20 = vadd.f32 %v688_v59, %v575_v46 }
 0x12a   : > { %v784_v61 = vadd.f32 %v2394_v3, %v689_v20 }
 0x12c   : > { %738 = vmatmul.f32.gmra.mxu2 %v2262_v41  ;;  %1713 = vst [vmem:[%s2166_s17 + $0x110] sm:$0xff] %v784_v61  ;;  %1004 = vmatmul.f32.gmra.mxu0 %v784_v61  ;;  %v593_v41 = vpop.f32.mrf.mxu1  ;;  %v488_v46 = vpop.f32.mrf.mxu3 }
 0x12d   : > { %v489_v4 = vadd.f32 %v2161_v42, %v488_v46  ;;  %1775 = vmatmul.msk.f32.gmra.mxu3 %vm286_vm1, %v2117_v35 }
 0x12e   : > { %1705 = vmatmul.msk.f32.gmra.mxu1 %vm286_vm1, %v2213_v62 }
 0x12f   : > { %v691_v21 = vpop.f32.mrf.mxu2  ;;  %528 = vst [vmem:[%s2166_s17 + $0xe0] sm:$0xff] %v489_v4 }
 0x130   : > { %v692_v27 = vadd.f32 %v691_v21, %v578_v43 }
 0x132   : > { %v785_v14 = vadd.f32 %v2394_v3, %v692_v27 }
 0x134   : > { %741 = vmatmul.f32.gmra.mxu2 %v2287_v52  ;;  %1714 = vst [vmem:[%s2166_s17 + $0x118] sm:$0xff] %v785_v14  ;;  %1007 = vmatmul.f32.gmra.mxu0 %v785_v14  ;;  %v596_v52 = vpop.f32.mrf.mxu1  ;;  %v491_v49 = vpop.f32.mrf.mxu3 }
 0x135   : > { %v492_v7 = vadd.f32 %v2161_v42, %v491_v49  ;;  %1776 = vmatmul.msk.f32.gmra.mxu3 %vm286_vm1, %v2129_v37 }
 0x136   : > { %1706 = vmatmul.msk.f32.gmra.mxu1 %vm286_vm1, %v2231_v12 }
 0x137   : > { %v694_v34 = vpop.f32.mrf.mxu2  ;;  %529 = vst [vmem:[%s2166_s17 + $0xe8] sm:$0xff] %v492_v7 }
 0x138   : > { %v695_v17 = vadd.f32 %v694_v34, %v581_v48 }
 0x13a   : > { %v786_v25 = vadd.f32 %v2394_v3, %v695_v17 }
 0x13c   : > { %744 = vmatmul.f32.gmra.mxu2 %v2311_v63  ;;  %1715 = vst [vmem:[%s2166_s17 + $0x120] sm:$0xff] %v786_v25  ;;  %1010 = vmatmul.f32.gmra.mxu0 %v786_v25  ;;  %v599_v63 = vpop.f32.mrf.mxu1  ;;  %v494_v13 = vpop.f32.mrf.mxu3 }
 0x13d   : > { %1777 = vmatmul.msk.f32.gmra.mxu3 %vm286_vm1, %v2139_v39 }
 0x13e   : > { %1707 = vmatmul.msk.f32.gmra.mxu1 %vm286_vm1, %v2256_v28 }
 0x13f   : > { %v697_v5 = vpop.f32.mrf.mxu2 }
 0x140   : > { %v698_v26 = vadd.f32 %v697_v5, %v584_v54 }
 0x142   : > { %v787_v6 = vadd.f32 %v2394_v3, %v698_v26 }
 0x144   : > { %747 = vmatmul.f32.gmra.mxu2 %v2332_v18  ;;  %1716 = vst [vmem:[%s2166_s17 + $0x128] sm:$0xff] %v787_v6  ;;  %1013 = vmatmul.f32.gmra.mxu0 %v787_v6  ;;  %v602_v18 = vpop.f32.mrf.mxu1  ;;  %v497_v21 = vpop.f32.mrf.mxu3 }
 0x145   : > { %v498_v27 = vadd.f32 %v2161_v42, %v497_v21  ;;  %1778 = vmatmul.msk.f32.gmra.mxu3 %vm286_vm1, %v2144_v40 }
 0x146   : > { %1708 = vmatmul.msk.f32.gmra.mxu1 %vm286_vm1, %v2281_v47 }
 0x147   : > { %v700_v8 = vpop.f32.mrf.mxu2  ;;  %531 = vst [vmem:[%s2166_s17 + $0xf8] sm:$0xff] %v498_v27 }
 0x148   : > { %v701_v1 = vadd.f32 %v700_v8, %v587_v60  ;;  %v495_v60 = vadd.f32 %v2161_v42, %v494_v13 }
 0x14a   : > { %v788_v24 = vadd.f32 %v2394_v3, %v701_v1  ;;  %530 = vst [vmem:[%s2166_s17 + $0xf0] sm:$0xff] %v495_v60 }
 0x14c   : > { %750 = vmatmul.f32.gmra.mxu2 %v2350_v31  ;;  %1717 = vst [vmem:[%s2166_s17 + $0x130] sm:$0xff] %v788_v24  ;;  %1016 = vmatmul.f32.gmra.mxu0 %v788_v24  ;;  %v605_v31 = vpop.f32.mrf.mxu1  ;;  %v886_v39 = vpop.f32.mrf.mxu3 }
 0x14d   : > { %1779 = vmatmul.msk.f32.gmra.mxu3 %vm286_vm1, %v2017_v9 }
 0x14e   : > { %1709 = vmatmul.msk.f32.gmra.mxu1 %vm286_vm1, %v2305_v57 }
 0x14f   : > { %v703_v15 = vpop.f32.mrf.mxu2 }
 0x150   : > { %v704_v2 = vadd.f32 %v703_v15, %v590_v53 }
 0x152   : > { %v789_v43 = vadd.f32 %v2394_v3, %v704_v2 }
 0x154   : > { %753 = vmatmul.f32.gmra.mxu2 %v477_v11  ;;  %1718 = vst [vmem:[%s2166_s17 + $0x138] sm:$0xff] %v789_v43  ;;  %1019 = vmatmul.f32.gmra.mxu0 %v789_v43  ;;  %v608_v54 = vpop.f32.mrf.mxu1  ;;  %v889_v5 = vpop.f32.mrf.mxu3 }
 0x155   : > { %1780 = vmatmul.msk.f32.gmra.mxu3 %vm286_vm1, %v2042_v16 }
 0x156   : > { %1710 = vmatmul.msk.f32.gmra.mxu1 %vm286_vm1, %v2323_v0 }
 0x157   : > { %v706_v22 = vpop.f32.mrf.mxu2 }
 0x158   : > { %v707_v48 = vadd.f32 %v706_v22, %v593_v41 }
 0x15a   : > { %v790_v50 = vadd.f32 %v2394_v3, %v707_v48 }
 0x15c   : > { %756 = vmatmul.f32.gmra.mxu2 %v480_v19  ;;  %1719 = vst [vmem:[%s2166_s17 + $0x140] sm:$0xff] %v790_v50  ;;  %1022 = vmatmul.f32.gmra.mxu0 %v790_v50  ;;  %v611_v20 = vpop.f32.mrf.mxu1  ;;  %v892_v32 = vpop.f32.mrf.mxu3 }
 0x15d   : > { %1781 = vmatmul.msk.f32.gmra.mxu3 %vm286_vm1, %v2069_v23 }
 0x15f   : > { %v709_v29 = vpop.f32.mrf.mxu2 }
 0x160   : > { %v710_v55 = vadd.f32 %v709_v29, %v596_v52 }
 0x162   : > { %v791_v59 = vadd.f32 %v2394_v3, %v710_v55 }
 0x164   : > { %759 = vmatmul.f32.gmra.mxu2 %v483_v33  ;;  %1720 = vst [vmem:[%s2166_s17 + $0x148] sm:$0xff] %v791_v59  ;;  %1025 = vmatmul.f32.gmra.mxu0 %v791_v59  ;;  %v614_v10 = vpop.f32.mrf.mxu1 }
 0x165   : > { %1782 = vmatmul.msk.f32.gmra.mxu3 %vm286_vm1, %v2096_v30 }
 0x167   : > { %v712_v35 = vpop.f32.mrf.mxu2 }
 0x168   : > { %v713_v61 = vadd.f32 %v712_v35, %v599_v63  ;;  %v895_v63 = vpop.f32.mrf.mxu3 }
 0x16a   : > { %v792_v53 = vadd.f32 %v2394_v3, %v713_v61 }
 0x16c   : > { %762 = vmatmul.f32.gmra.mxu2 %v486_v45  ;;  %1721 = vst [vmem:[%s2166_s17 + $0x150] sm:$0xff] %v792_v53  ;;  %1028 = vmatmul.f32.gmra.mxu0 %v792_v53  ;;  %v617_v34 = vpop.f32.mrf.mxu1  ;;  %v2511_v45 = vld [vmem:[%s2844_s5 + $0x1] ss:$0 sm:$0xff] }
 0x16d   : > { %1783 = vmatmul.msk.f32.gmra.mxu3 %vm286_vm1, %v2120_v36 }
 0x16f   : > { %v715_v37 = vpop.f32.mrf.mxu2 }
 0x170   : > { %v716_v11 = vadd.f32 %v715_v37, %v602_v18  ;;  %v898_v15 = vpop.f32.mrf.mxu3 }
 0x172   : > { %v793_v14 = vadd.f32 %v2394_v3, %v716_v11 }
 0x174   : > { %765 = vmatmul.f32.gmra.mxu2 %v489_v4  ;;  %1722 = vst [vmem:[%s2166_s17 + $0x158] sm:$0xff] %v793_v14  ;;  %1031 = vmatmul.f32.gmra.mxu0 %v793_v14  ;;  %v620_v25 = vpop.f32.mrf.mxu1 }
 0x175   : > { %1784 = vmatmul.msk.f32.gmra.mxu3 %vm286_vm1, %v2132_v38 }
 0x177   : > { %v718_v42 = vpop.f32.mrf.mxu2 }
 0x178   : > { %v719_v41 = vadd.f32 %v718_v42, %v605_v31  ;;  %v901_v31 = vpop.f32.mrf.mxu3 }
 0x17a   : > { %v794_v17 = vadd.f32 %v2394_v3, %v719_v41 }
 0x17c   : > { %768 = vmatmul.f32.gmra.mxu2 %v492_v7  ;;  %1723 = vst [vmem:[%s2166_s17 + $0x160] sm:$0xff] %v794_v17  ;;  %1034 = vmatmul.f32.gmra.mxu0 %v794_v17  ;;  %v623_v9 = vpop.f32.mrf.mxu1 }
 0x17d   : > { %1785 = vmatmul.msk.f32.gmra.mxu3 %vm286_vm1, %v2182_v51 }
 0x17f   : > { %v721_v58 = vpop.f32.mrf.mxu2 }
 0x180   : > { %v722_v19 = vadd.f32 %v721_v58, %v608_v54  ;;  %v904_v55 = vpop.f32.mrf.mxu3 }
 0x182   : > { %v795_v40 = vadd.f32 %v2394_v3, %v722_v19 }
 0x184   : > { %771 = vmatmul.f32.gmra.mxu2 %v495_v60  ;;  %1724 = vst [vmem:[%s2166_s17 + $0x168] sm:$0xff] %v795_v40  ;;  %1037 = vmatmul.f32.gmra.mxu0 %v795_v40  ;;  %v626_v16 = vpop.f32.mrf.mxu1 }
 0x185   : > { %1786 = vmatmul.msk.f32.gmra.mxu3 %vm286_vm1, %v2196_v56 }
 0x187   : > { %v724_v52 = vpop.f32.mrf.mxu2 }
 0x188   : > { %v725_v26 = vadd.f32 %v724_v52, %v611_v20  ;;  %v907_v61 = vpop.f32.mrf.mxu3 }
 0x18a   : > { %v796_v6 = vadd.f32 %v2394_v3, %v725_v26 }
 0x18c   : > { %774 = vmatmul.f32.gmra.mxu2 %v498_v27  ;;  %1725 = vst [vmem:[%s2166_s17 + $0x170] sm:$0xff] %v796_v6  ;;  %1040 = vmatmul.f32.gmra.mxu0 %v796_v6  ;;  %v629_v30 = vpop.f32.mrf.mxu1 }
 0x18d   : > { %1787 = vmatmul.msk.f32.gmra.mxu3 %vm286_vm1, %v2213_v62 }
 0x18f   : > { %v727_v33 = vpop.f32.mrf.mxu2 }
 0x190   : > { %v728_v8 = vadd.f32 %v727_v33, %v614_v10  ;;  %v910_v14 = vpop.f32.mrf.mxu3 }
 0x192   : > { %v797_v1 = vadd.f32 %v2394_v3, %v728_v8 }
 0x194   : > { %1726 = vst [vmem:[%s2166_s17 + $0x178] sm:$0xff] %v797_v1  ;;  %1043 = vmatmul.f32.gmra.mxu0 %v797_v1  ;;  %v632_v36 = vpop.f32.mrf.mxu1 }
 0x195   : > { %1788 = vmatmul.msk.f32.gmra.mxu3 %vm286_vm1, %v2231_v12 }
 0x197   : > { %v730_v44 = vpop.f32.mrf.mxu2 }
 0x198   : > { %v731_v24 = vadd.f32 %v730_v44, %v617_v34  ;;  %v913_v19 = vpop.f32.mrf.mxu3 }
 0x199   : > { %v999_v23 = vpop.f32.mrf.mxu0 }
 0x19a   : > { %v798_v18 = vadd.f32 %v2394_v3, %v731_v24  ;;  %v1000_v2 = vadd.f32 %v999_v23, %v886_v39 }
 0x19c   : > { %1727 = vst [vmem:[%s2166_s17 + $0x180] sm:$0xff] %v798_v18  ;;  %v1100_v46 = vadd.f32 %v2511_v45, %v1000_v2  ;;  %1046 = vmatmul.f32.gmra.mxu0 %v798_v18  ;;  %v635_v27 = vpop.f32.mrf.mxu1 }
 0x19d   : > { %1789 = vmatmul.msk.f32.gmra.mxu3 %vm286_vm1, %v2256_v28 }
 0x19e   : > { %1794 = vst [vmem:[%s2166_s17 + $0x200] sm:$0xff] %v1100_v46 }
 0x19f   : > { %v733_v43 = vpop.f32.mrf.mxu2 }
 0x1a0   : > { %v734_v4 = vadd.f32 %v733_v43, %v620_v25  ;;  %v916_v6 = vpop.f32.mrf.mxu3 }
 0x1a1   : > { %v1002_v22 = vpop.f32.mrf.mxu0 }
 0x1a2   : > { %v799_v48 = vadd.f32 %v2394_v3, %v734_v4  ;;  %v1003_v49 = vadd.f32 %v1002_v22, %v889_v5 }
 0x1a4   : > { %1728 = vst [vmem:[%s2166_s17 + $0x188] sm:$0xff] %v799_v48  ;;  %v1101_v50 = vadd.f32 %v2511_v45, %v1003_v49  ;;  %1049 = vmatmul.f32.gmra.mxu0 %v799_v48  ;;  %v638_v39 = vpop.f32.mrf.mxu1 }
 0x1a5   : > { %1790 = vmatmul.msk.f32.gmra.mxu3 %vm286_vm1, %v2281_v47 }
 0x1a6   : > { %1795 = vst [vmem:[%s2166_s17 + $0x208] sm:$0xff] %v1101_v50 }
 0x1a7   : > { %v736_v7 = vpop.f32.mrf.mxu2 }
 0x1a8   : > { %v737_v29 = vadd.f32 %v736_v7, %v623_v9  ;;  %v919_v44 = vpop.f32.mrf.mxu3 }
 0x1a9   : > { %v1005_v54 = vpop.f32.mrf.mxu0 }
 0x1aa   : > { %v800_v13 = vadd.f32 %v2394_v3, %v737_v29  ;;  %v1006_v59 = vadd.f32 %v1005_v54, %v892_v32 }
 0x1ac   : > { %1729 = vst [vmem:[%s2166_s17 + $0x190] sm:$0xff] %v800_v13  ;;  %v1102_v60 = vadd.f32 %v2511_v45, %v1006_v59  ;;  %1052 = vmatmul.f32.gmra.mxu0 %v800_v13  ;;  %v641_v52 = vpop.f32.mrf.mxu1 }
 0x1ad   : > { %1791 = vmatmul.msk.f32.gmra.mxu3 %vm286_vm1, %v2305_v57 }
 0x1ae   : > { %1796 = vst [vmem:[%s2166_s17 + $0x210] sm:$0xff] %v1102_v60 }
 0x1af   : > { %v739_v35 = vpop.f32.mrf.mxu2 }
 0x1b0   : > { %v740_v38 = vadd.f32 %v739_v35, %v626_v16  ;;  %v922_v46 = vpop.f32.mrf.mxu3 }
 0x1b1   : > { %v1008_v20 = vpop.f32.mrf.mxu0 }
 0x1b2   : > { %v801_v21 = vadd.f32 %v2394_v3, %v740_v38  ;;  %v1009_v53 = vadd.f32 %v1008_v20, %v895_v63 }
 0x1b4   : > { %1730 = vst [vmem:[%s2166_s17 + $0x198] sm:$0xff] %v801_v21  ;;  %v1103_v37 = vadd.f32 %v2511_v45, %v1009_v53  ;;  %1055 = vmatmul.f32.gmra.mxu0 %v801_v21  ;;  %v644_v12 = vpop.f32.mrf.mxu1 }
 0x1b5   : > { %1792 = vmatmul.msk.f32.gmra.mxu3 %vm286_vm1, %v2323_v0 }
 0x1b6   : > { %1797 = vst [vmem:[%s2166_s17 + $0x218] sm:$0xff] %v1103_v37 }
 0x1b7   : > { %v742_v10 = vpop.f32.mrf.mxu2 }
 0x1b8   : > { %v743_v51 = vadd.f32 %v742_v10, %v629_v30  ;;  %v925_v49 = vpop.f32.mrf.mxu3 }
 0x1b9   : > { %v1011_v11 = vpop.f32.mrf.mxu0 }
 0x1ba   : > { %v802_v42 = vadd.f32 %v2394_v3, %v743_v51  ;;  %v1012_v34 = vadd.f32 %v1011_v11, %v898_v15 }
 0x1bc   : > { %1731 = vst [vmem:[%s2166_s17 + $0x1a0] sm:$0xff] %v802_v42  ;;  %v1104_v41 = vadd.f32 %v2511_v45, %v1012_v34  ;;  %1058 = vmatmul.f32.gmra.mxu0 %v802_v42  ;;  %v647_v4 = vpop.f32.mrf.mxu1 }
 0x1be   : > { %1798 = vst [vmem:[%s2166_s17 + $0x220] sm:$0xff] %v1104_v41 }
 0x1bf   : > { %v745_v17 = vpop.f32.mrf.mxu2 }
 0x1c0   : > { %v746_v56 = vadd.f32 %v745_v17, %v632_v36  ;;  %v928_v13 = vpop.f32.mrf.mxu3 }
 0x1c1   : > { %v1014_v58 = vpop.f32.mrf.mxu0 }
 0x1c2   : > { %v803_v25 = vadd.f32 %v2394_v3, %v746_v56  ;;  %v1015_v5 = vadd.f32 %v1014_v58, %v901_v31 }
 0x1c4   : > { %1732 = vst [vmem:[%s2166_s17 + $0x1a8] sm:$0xff] %v803_v25  ;;  %v1105_v40 = vadd.f32 %v2511_v45, %v1015_v5  ;;  %1061 = vmatmul.f32.gmra.mxu0 %v803_v25  ;;  %v650_v36 = vpop.f32.mrf.mxu1 }
 0x1c6   : > { %1799 = vst [vmem:[%s2166_s17 + $0x228] sm:$0xff] %v1105_v40 }
 0x1c7   : > { %v748_v26 = vpop.f32.mrf.mxu2 }
 0x1c8   : > { %v749_v62 = vadd.f32 %v748_v26, %v635_v27  ;;  %v931_v0 = vpop.f32.mrf.mxu3 }
 0x1c9   : > { %v1017_v32 = vpop.f32.mrf.mxu0 }
 0x1ca   : > { %v804_v9 = vadd.f32 %v2394_v3, %v749_v62  ;;  %v1018_v33 = vadd.f32 %v1017_v32, %v904_v55 }
 0x1cc   : > { %1733 = vst [vmem:[%s2166_s17 + $0x1b0] sm:$0xff] %v804_v9  ;;  %v1106_v8 = vadd.f32 %v2511_v45, %v1018_v33  ;;  %1064 = vmatmul.f32.gmra.mxu0 %v804_v9  ;;  %v653_v20 = vpop.f32.mrf.mxu1 }
 0x1ce   : > { %1800 = vst [vmem:[%s2166_s17 + $0x230] sm:$0xff] %v1106_v8 }
 0x1cf   : > { %v751_v63 = vpop.f32.mrf.mxu2 }
 0x1d0   : > { %v752_v1 = vadd.f32 %v751_v63, %v638_v39  ;;  %v934_v41 = vpop.f32.mrf.mxu3 }
 0x1d1   : > { %v1020_v16 = vpop.f32.mrf.mxu0 }
 0x1d2   : > { %v805_v24 = vadd.f32 %v2394_v3, %v752_v1  ;;  %v1021_v23 = vadd.f32 %v1020_v16, %v907_v61 }
 0x1d4   : > { %1734 = vst [vmem:[%s2166_s17 + $0x1b8] sm:$0xff] %v805_v24  ;;  %v1107_v15 = vadd.f32 %v2511_v45, %v1021_v23  ;;  %1067 = vmatmul.f32.gmra.mxu0 %v805_v24 }
 0x1d6   : > { %1801 = vst [vmem:[%s2166_s17 + $0x238] sm:$0xff] %v1107_v15 }
 0x1d7   : > { %v754_v18 = vpop.f32.mrf.mxu2 }
 0x1d8   : > { %v755_v28 = vadd.f32 %v754_v18, %v641_v52  ;;  %v937_v52 = vpop.f32.mrf.mxu3 }
 0x1d9   : > { %v1023_v2 = vpop.f32.mrf.mxu0 }
 0x1da   : > { %v806_v30 = vadd.f32 %v2394_v3, %v755_v28  ;;  %v1024_v43 = vadd.f32 %v1023_v2, %v910_v14  ;;  %v656_v14 = vpop.f32.mrf.mxu1 }
 0x1dc   : > { %1735 = vst [vmem:[%s2166_s17 + $0x1c0] sm:$0xff] %v806_v30  ;;  %v1108_v22 = vadd.f32 %v2511_v45, %v1024_v43  ;;  %1070 = vmatmul.f32.gmra.mxu0 %v806_v30 }
 0x1de   : > { %1802 = vst [vmem:[%s2166_s17 + $0x240] sm:$0xff] %v1108_v22 }
 0x1df   : > { %v757_v31 = vpop.f32.mrf.mxu2 }
 0x1e0   : > { %v758_v47 = vadd.f32 %v757_v31, %v644_v12  ;;  %v940_v1 = vpop.f32.mrf.mxu3 }
 0x1e1   : > { %v1026_v48 = vpop.f32.mrf.mxu0 }
 0x1e2   : > { %v807_v50 = vadd.f32 %v2394_v3, %v758_v47  ;;  %v1027_v7 = vadd.f32 %v1026_v48, %v913_v19  ;;  %v659_v5 = vpop.f32.mrf.mxu1 }
 0x1e4   : > { %1736 = vst [vmem:[%s2166_s17 + $0x1c8] sm:$0xff] %v807_v50  ;;  %v1109_v29 = vadd.f32 %v2511_v45, %v1027_v7  ;;  %1073 = vmatmul.f32.gmra.mxu0 %v807_v50 }
 0x1e6   : > { %1803 = vst [vmem:[%s2166_s17 + $0x248] sm:$0xff] %v1109_v29 }
 0x1e7   : > { %v760_v54 = vpop.f32.mrf.mxu2 }
 0x1e8   : > { %v761_v57 = vadd.f32 %v760_v54, %v647_v4  ;;  %v943_v18 = vpop.f32.mrf.mxu3 }
 0x1e9   : > { %v1029_v55 = vpop.f32.mrf.mxu0 }
 0x1ea   : > { %v808_v59 = vadd.f32 %v2394_v3, %v761_v57  ;;  %v1030_v60 = vadd.f32 %v1029_v55, %v916_v6  ;;  %v662_v8 = vpop.f32.mrf.mxu1 }
 0x1ec   : > { %1737 = vst [vmem:[%s2166_s17 + $0x1d0] sm:$0xff] %v808_v59  ;;  %v1110_v35 = vadd.f32 %v2511_v45, %v1030_v60  ;;  %1076 = vmatmul.f32.gmra.mxu0 %v808_v59 }
 0x1ee   : > { %1804 = vst [vmem:[%s2166_s17 + $0x250] sm:$0xff] %v1110_v35 }
 0x1ef   : > { %v763_v38 = vpop.f32.mrf.mxu2 }
 0x1f0   : > { %v764_v61 = vadd.f32 %v763_v38, %v650_v36  ;;  %v946_v43 = vpop.f32.mrf.mxu3 }
 0x1f1   : > { %v1032_v21 = vpop.f32.mrf.mxu0 }
 0x1f2   : > { %v809_v53 = vadd.f32 %v2394_v3, %v764_v61  ;;  %v1033_v27 = vadd.f32 %v1032_v21, %v919_v44 }
 0x1f4   : > { %1738 = vst [vmem:[%s2166_s17 + $0x1d8] sm:$0xff] %v809_v53  ;;  %v1111_v37 = vadd.f32 %v2511_v45, %v1033_v27  ;;  %1079 = vmatmul.f32.gmra.mxu0 %v809_v53 }
 0x1f6   : > { %1805 = vst [vmem:[%s2166_s17 + $0x258] sm:$0xff] %v1111_v37 }
 0x1f7   : > { %v766_v10 = vpop.f32.mrf.mxu2 }
 0x1f8   : > { %v767_v51 = vadd.f32 %v766_v10, %v653_v20  ;;  %v949_v47 = vpop.f32.mrf.mxu3 }
 0x1f9   : > { %v1035_v11 = vpop.f32.mrf.mxu0 }
 0x1fa   : > { %v810_v42 = vadd.f32 %v2394_v3, %v767_v51  ;;  %v1036_v34 = vadd.f32 %v1035_v11, %v922_v46 }
 0x1fc   : > { %1739 = vst [vmem:[%s2166_s17 + $0x1e0] sm:$0xff] %v810_v42  ;;  %v1112_v39 = vadd.f32 %v2511_v45, %v1036_v34  ;;  %1082 = vmatmul.f32.gmra.mxu0 %v810_v42 }
 0x1fe   : > { %1806 = vst [vmem:[%s2166_s17 + $0x260] sm:$0xff] %v1112_v39 }
 0x1ff   : > { %v769_v17 = vpop.f32.mrf.mxu2 }
 0x200   : > { %v770_v56 = vadd.f32 %v769_v17, %v656_v14  ;;  %v952_v7 = vpop.f32.mrf.mxu3 }
 0x201   : > { %v1038_v58 = vpop.f32.mrf.mxu0 }
 0x202   : > { %v811_v19 = vadd.f32 %v2394_v3, %v770_v56  ;;  %v1039_v25 = vadd.f32 %v1038_v58, %v925_v49 }
 0x204   : > { %1740 = vst [vmem:[%s2166_s17 + $0x1e8] sm:$0xff] %v811_v19  ;;  %v1113_v40 = vadd.f32 %v2511_v45, %v1039_v25  ;;  %1085 = vmatmul.f32.gmra.mxu0 %v811_v19 }
 0x206   : > { %1807 = vst [vmem:[%s2166_s17 + $0x268] sm:$0xff] %v1113_v40 }
 0x207   : > { %v772_v26 = vpop.f32.mrf.mxu2 }
 0x208   : > { %v773_v62 = vadd.f32 %v772_v26, %v659_v5  ;;  %v955_v55 = vpop.f32.mrf.mxu3 }
 0x209   : > { %v1041_v32 = vpop.f32.mrf.mxu0 }
 0x20a   : > { %v812_v6 = vadd.f32 %v2394_v3, %v773_v62  ;;  %v1042_v9 = vadd.f32 %v1041_v32, %v928_v13 }
 0x20c   : > { %1741 = vst [vmem:[%s2166_s17 + $0x1f0] sm:$0xff] %v812_v6  ;;  %v1114_v33 = vadd.f32 %v2511_v45, %v1042_v9  ;;  %1088 = vmatmul.f32.gmra.mxu0 %v812_v6 }
 0x20e   : > { %1808 = vst [vmem:[%s2166_s17 + $0x270] sm:$0xff] %v1114_v33 }
 0x20f   : > { %v775_v63 = vpop.f32.mrf.mxu2 }
 0x210   : > { %v776_v12 = vadd.f32 %v775_v63, %v662_v8  ;;  %v958_v38 = vpop.f32.mrf.mxu3 }
 0x211   : > { %v1044_v16 = vpop.f32.mrf.mxu0 }
 0x212   : > { %v813_v44 = vadd.f32 %v2394_v3, %v776_v12  ;;  %v1045_v24 = vadd.f32 %v1044_v16, %v931_v0 }
 0x214   : > { %1742 = vst [vmem:[%s2166_s17 + $0x1f8] sm:$0xff] %v813_v44  ;;  %v1115_v23 = vadd.f32 %v2511_v45, %v1045_v24  ;;  %1091 = vmatmul.f32.vlgmr.msra.gmra.mxu2 %v813_v44  ;;  %v1393_v24 = vld [vmem:[%s2166_s17] sm:$0xff] (%p1962_p4) }
 0x215   : > { %1394 = vst [vmem:[%s2637_s26] sm:$0xff] (%p1962_p4), %v1393_v24  ;;  %v1521_v24 = vld [vmem:[%s2166_s17 + $0x200] sm:$0xff] (%p1962_p4) }
 0x216   : > { %1809 = vst [vmem:[%s2166_s17 + $0x278] sm:$0xff] %v1115_v23  ;;  %v1395_v23 = vld [vmem:[%s2166_s17 + $0x8] sm:$0xff] (%p1962_p4) }
 0x217   : > { %1396 = vst [vmem:[%s2637_s26 + $0x8] sm:$0xff] (%p1962_p4), %v1395_v23  ;;  %v1523_v23 = vld [vmem:[%s2166_s17 + $0x208] sm:$0xff] (%p1962_p4) }
 0x218   : > { %v961_v53 = vpop.f32.mrf.mxu3  ;;  %1522 = vst [vmem:[%s2637_s26 + $0x400] sm:$0xff] (%p1962_p4), %v1521_v24 }
 0x219   : > { %v1047_v15 = vpop.f32.mrf.mxu0  ;;  %1524 = vst [vmem:[%s2637_s26 + $0x408] sm:$0xff] (%p1962_p4), %v1523_v23 }
 0x21a   : > { %v1048_v28 = vadd.f32 %v1047_v15, %v934_v41  ;;  %v1399_v15 = vld [vmem:[%s2166_s17 + $0x18] sm:$0xff] (%p1962_p4) }
 0x21b   : > { %1400 = vst [vmem:[%s2637_s26 + $0x18] sm:$0xff] (%p1962_p4), %v1399_v15  ;;  %v1527_v15 = vld [vmem:[%s2166_s17 + $0x218] sm:$0xff] (%p1962_p4) }
 0x21c   : > { %v1116_v2 = vadd.f32 %v2511_v45, %v1048_v28  ;;  %v1403_v28 = vld [vmem:[%s2166_s17 + $0x28] sm:$0xff] (%p1962_p4)  ;;  %1528 = vst [vmem:[%s2637_s26 + $0x418] sm:$0xff] (%p1962_p4), %v1527_v15 }
 0x21d   : > { %1404 = vst [vmem:[%s2637_s26 + $0x28] sm:$0xff] (%p1962_p4), %v1403_v28  ;;  %v1531_v28 = vld [vmem:[%s2166_s17 + $0x228] sm:$0xff] (%p1962_p4) }
 0x21e   : > { %1810 = vst [vmem:[%s2166_s17 + $0x280] sm:$0xff] %v1116_v2  ;;  %v1405_v2 = vld [vmem:[%s2166_s17 + $0x30] sm:$0xff] (%p1962_p4) }
 0x21f   : > { %1406 = vst [vmem:[%s2637_s26 + $0x30] sm:$0xff] (%p1962_p4), %v1405_v2  ;;  %v1533_v2 = vld [vmem:[%s2166_s17 + $0x230] sm:$0xff] (%p1962_p4) }
 0x220   : > { %v964_v51 = vpop.f32.mrf.mxu3  ;;  %1532 = vst [vmem:[%s2637_s26 + $0x428] sm:$0xff] (%p1962_p4), %v1531_v28 }
 0x221   : > { %v1050_v46 = vpop.f32.mrf.mxu0  ;;  %1534 = vst [vmem:[%s2637_s26 + $0x430] sm:$0xff] (%p1962_p4), %v1533_v2 }
 0x222   : > { %v1051_v30 = vadd.f32 %v1050_v46, %v937_v52  ;;  %v1407_v46 = vld [vmem:[%s2166_s17 + $0x38] sm:$0xff] (%p1962_p4) }
 0x223   : > { %1408 = vst [vmem:[%s2637_s26 + $0x38] sm:$0xff] (%p1962_p4), %v1407_v46  ;;  %v1535_v46 = vld [vmem:[%s2166_s17 + $0x238] sm:$0xff] (%p1962_p4) }
 0x224   : > { %v1117_v3 = vadd.f32 %v2511_v45, %v1051_v30  ;;  %v1409_v30 = vld [vmem:[%s2166_s17 + $0x40] sm:$0xff] (%p1962_p4)  ;;  %1536 = vst [vmem:[%s2637_s26 + $0x438] sm:$0xff] (%p1962_p4), %v1535_v46 }
 0x225   : > { %1410 = vst [vmem:[%s2637_s26 + $0x40] sm:$0xff] (%p1962_p4), %v1409_v30  ;;  %v1537_v30 = vld [vmem:[%s2166_s17 + $0x240] sm:$0xff] (%p1962_p4) }
 0x226   : > { %1811 = vst [vmem:[%s2166_s17 + $0x288] sm:$0xff] %v1117_v3  ;;  %v1413_v3 = vld [vmem:[%s2166_s17 + $0x50] sm:$0xff] (%p1962_p4) }
 0x227   : > { %1414 = vst [vmem:[%s2637_s26 + $0x50] sm:$0xff] (%p1962_p4), %v1413_v3  ;;  %v1541_v3 = vld [vmem:[%s2166_s17 + $0x250] sm:$0xff] (%p1962_p4) }
 0x228   : > { %v967_v41 = vpop.f32.mrf.mxu3  ;;  %1538 = vst [vmem:[%s2637_s26 + $0x440] sm:$0xff] (%p1962_p4), %v1537_v30 }
 0x229   : > { %v1053_v4 = vpop.f32.mrf.mxu0  ;;  %1542 = vst [vmem:[%s2637_s26 + $0x450] sm:$0xff] (%p1962_p4), %v1541_v3 }
 0x22a   : > { %v1054_v22 = vadd.f32 %v1053_v4, %v940_v1  ;;  %v1415_v4 = vld [vmem:[%s2166_s17 + $0x58] sm:$0xff] (%p1962_p4) }
 0x22b   : > { %1416 = vst [vmem:[%s2637_s26 + $0x58] sm:$0xff] (%p1962_p4), %v1415_v4  ;;  %v1543_v4 = vld [vmem:[%s2166_s17 + $0x258] sm:$0xff] (%p1962_p4) }
 0x22c   : > { %v1118_v31 = vadd.f32 %v2511_v45, %v1054_v22  ;;  %v1417_v22 = vld [vmem:[%s2166_s17 + $0x60] sm:$0xff] (%p1962_p4)  ;;  %1544 = vst [vmem:[%s2637_s26 + $0x458] sm:$0xff] (%p1962_p4), %v1543_v4 }
 0x22d   : > { %1418 = vst [vmem:[%s2637_s26 + $0x60] sm:$0xff] (%p1962_p4), %v1417_v22  ;;  %v1545_v22 = vld [vmem:[%s2166_s17 + $0x260] sm:$0xff] (%p1962_p4) }
 0x22e   : > { %1812 = vst [vmem:[%s2166_s17 + $0x290] sm:$0xff] %v1118_v31  ;;  %v1419_v31 = vld [vmem:[%s2166_s17 + $0x68] sm:$0xff] (%p1962_p4) }
 0x22f   : > { %1420 = vst [vmem:[%s2637_s26 + $0x68] sm:$0xff] (%p1962_p4), %v1419_v31  ;;  %v1547_v31 = vld [vmem:[%s2166_s17 + $0x268] sm:$0xff] (%p1962_p4) }
 0x230   : > { %v970_v19 = vpop.f32.mrf.mxu3  ;;  %1546 = vst [vmem:[%s2637_s26 + $0x460] sm:$0xff] (%p1962_p4), %v1545_v22 }
 0x231   : > { %v1056_v48 = vpop.f32.mrf.mxu0  ;;  %1548 = vst [vmem:[%s2637_s26 + $0x468] sm:$0xff] (%p1962_p4), %v1547_v31 }
 0x232   : > { %v1057_v49 = vadd.f32 %v1056_v48, %v943_v18  ;;  %v1401_v18 = vld [vmem:[%s2166_s17 + $0x20] sm:$0xff] (%p1962_p4)  ;;  %v1423_v48 = vld [vmem:[%s2166_s17 + $0x78] sm:$0xff] (%p1962_p4) }
 0x233   : > { %1402 = vst [vmem:[%s2637_s26 + $0x20] sm:$0xff] (%p1962_p4), %v1401_v18  ;;  %v1529_v18 = vld [vmem:[%s2166_s17 + $0x220] sm:$0xff] (%p1962_p4) }
 0x234   : > { %v1119_v50 = vadd.f32 %v2511_v45, %v1057_v49  ;;  %v1425_v49 = vld [vmem:[%s2166_s17 + $0x80] sm:$0xff] (%p1962_p4)  ;;  %1424 = vst [vmem:[%s2637_s26 + $0x78] sm:$0xff] (%p1962_p4), %v1423_v48  ;;  %v1551_v48 = vld [vmem:[%s2166_s17 + $0x278] sm:$0xff] (%p1962_p4) }
 0x235   : > { %1426 = vst [vmem:[%s2637_s26 + $0x80] sm:$0xff] (%p1962_p4), %v1425_v49  ;;  %v1553_v49 = vld [vmem:[%s2166_s17 + $0x280] sm:$0xff] (%p1962_p4) }
 0x236   : > { %1813 = vst [vmem:[%s2166_s17 + $0x298] sm:$0xff] %v1119_v50  ;;  %v1427_v50 = vld [vmem:[%s2166_s17 + $0x88] sm:$0xff] (%p1962_p4) }
 0x237   : > { %1428 = vst [vmem:[%s2637_s26 + $0x88] sm:$0xff] (%p1962_p4), %v1427_v50  ;;  %v1555_v50 = vld [vmem:[%s2166_s17 + $0x288] sm:$0xff] (%p1962_p4) }
 0x238   : > { %v973_v26 = vpop.f32.mrf.mxu3  ;;  %1530 = vst [vmem:[%s2637_s26 + $0x420] sm:$0xff] (%p1962_p4), %v1529_v18 }
 0x239   : > { %v1059_v29 = vpop.f32.mrf.mxu0  ;;  %1552 = vst [vmem:[%s2637_s26 + $0x478] sm:$0xff] (%p1962_p4), %v1551_v48 }
 0x23a   : > { %v1060_v36 = vadd.f32 %v1059_v29, %v946_v43  ;;  %v1411_v43 = vld [vmem:[%s2166_s17 + $0x48] sm:$0xff] (%p1962_p4)  ;;  %v1431_v29 = vld [vmem:[%s2166_s17 + $0x98] sm:$0xff] (%p1962_p4)  ;;  %1554 = vst [vmem:[%s2637_s26 + $0x480] sm:$0xff] (%p1962_p4), %v1553_v49 }
 0x23b   : > { %1412 = vst [vmem:[%s2637_s26 + $0x48] sm:$0xff] (%p1962_p4), %v1411_v43  ;;  %v1539_v43 = vld [vmem:[%s2166_s17 + $0x248] sm:$0xff] (%p1962_p4) }
 0x23c   : > { %v1120_v54 = vadd.f32 %v2511_v45, %v1060_v36  ;;  %v1433_v36 = vld [vmem:[%s2166_s17 + $0xa0] sm:$0xff] (%p1962_p4)  ;;  %1432 = vst [vmem:[%s2637_s26 + $0x98] sm:$0xff] (%p1962_p4), %v1431_v29 }
 0x23d   : > { %1434 = vst [vmem:[%s2637_s26 + $0xa0] sm:$0xff] (%p1962_p4), %v1433_v36  ;;  %v1559_v29 = vld [vmem:[%s2166_s17 + $0x298] sm:$0xff] (%p1962_p4) }
 0x23e   : > { %1814 = vst [vmem:[%s2166_s17 + $0x2a0] sm:$0xff] %v1120_v54  ;;  %v1435_v54 = vld [vmem:[%s2166_s17 + $0xa8] sm:$0xff] (%p1962_p4) }
 0x23f   : > { %1436 = vst [vmem:[%s2637_s26 + $0xa8] sm:$0xff] (%p1962_p4), %v1435_v54 }
 0x240   : > { %v976_v9 = vpop.f32.mrf.mxu3  ;;  %1540 = vst [vmem:[%s2637_s26 + $0x448] sm:$0xff] (%p1962_p4), %v1539_v43 }
 0x241   : > { %v1062_v57 = vpop.f32.mrf.mxu0  ;;  %1556 = vst [vmem:[%s2637_s26 + $0x488] sm:$0xff] (%p1962_p4), %v1555_v50 }
 0x242   : > { %v1063_v13 = vadd.f32 %v1062_v57, %v949_v47  ;;  %v1421_v47 = vld [vmem:[%s2166_s17 + $0x70] sm:$0xff] (%p1962_p4)  ;;  %1560 = vst [vmem:[%s2637_s26 + $0x498] sm:$0xff] (%p1962_p4), %v1559_v29 }
 0x243   : > { %1422 = vst [vmem:[%s2637_s26 + $0x70] sm:$0xff] (%p1962_p4), %v1421_v47  ;;  %v1437_v57 = vld [vmem:[%s2166_s17 + $0xb0] sm:$0xff] (%p1962_p4) }
 0x244   : > { %v1121_v59 = vadd.f32 %v2511_v45, %v1063_v13  ;;  %v1441_v13 = vld [vmem:[%s2166_s17 + $0xc0] sm:$0xff] (%p1962_p4)  ;;  %1438 = vst [vmem:[%s2637_s26 + $0xb0] sm:$0xff] (%p1962_p4), %v1437_v57  ;;  %v1549_v47 = vld [vmem:[%s2166_s17 + $0x270] sm:$0xff] (%p1962_p4) }
 0x245   : > { %1442 = vst [vmem:[%s2637_s26 + $0xc0] sm:$0xff] (%p1962_p4), %v1441_v13  ;;  %v1561_v36 = vld [vmem:[%s2166_s17 + $0x2a0] sm:$0xff] (%p1962_p4) }
 0x246   : > { %1815 = vst [vmem:[%s2166_s17 + $0x2a8] sm:$0xff] %v1121_v59  ;;  %v1443_v59 = vld [vmem:[%s2166_s17 + $0xc8] sm:$0xff] (%p1962_p4) }
 0x247   : > { %1444 = vst [vmem:[%s2637_s26 + $0xc8] sm:$0xff] (%p1962_p4), %v1443_v59 }
 0x248   : > { %v979_v1 = vpop.f32.mrf.mxu3  ;;  %1550 = vst [vmem:[%s2637_s26 + $0x470] sm:$0xff] (%p1962_p4), %v1549_v47 }
 0x249   : > { %v1065_v60 = vpop.f32.mrf.mxu0  ;;  %1562 = vst [vmem:[%s2637_s26 + $0x4a0] sm:$0xff] (%p1962_p4), %v1561_v36 }
 0x24a   : > { %v1066_v35 = vadd.f32 %v1065_v60, %v952_v7  ;;  %v1429_v7 = vld [vmem:[%s2166_s17 + $0x90] sm:$0xff] (%p1962_p4) }
 0x24b   : > { %1430 = vst [vmem:[%s2637_s26 + $0x90] sm:$0xff] (%p1962_p4), %v1429_v7  ;;  %v1445_v60 = vld [vmem:[%s2166_s17 + $0xd0] sm:$0xff] (%p1962_p4) }
 0x24c   : > { %v1122_v20 = vadd.f32 %v2511_v45, %v1066_v35  ;;  %v1447_v35 = vld [vmem:[%s2166_s17 + $0xd8] sm:$0xff] (%p1962_p4)  ;;  %1446 = vst [vmem:[%s2637_s26 + $0xd0] sm:$0xff] (%p1962_p4), %v1445_v60  ;;  %v1557_v7 = vld [vmem:[%s2166_s17 + $0x290] sm:$0xff] (%p1962_p4) }
 0x24d   : > { %1448 = vst [vmem:[%s2637_s26 + $0xd8] sm:$0xff] (%p1962_p4), %v1447_v35  ;;  %v1563_v54 = vld [vmem:[%s2166_s17 + $0x2a8] sm:$0xff] (%p1962_p4) }
 0x24e   : > { %1816 = vst [vmem:[%s2166_s17 + $0x2b0] sm:$0xff] %v1122_v20  ;;  %v1451_v20 = vld [vmem:[%s2166_s17 + $0xe8] sm:$0xff] (%p1962_p4) }
 0x24f   : > { %1452 = vst [vmem:[%s2637_s26 + $0xe8] sm:$0xff] (%p1962_p4), %v1451_v20 }
 0x250   : > { %1558 = vst [vmem:[%s2637_s26 + $0x490] sm:$0xff] (%p1962_p4), %v1557_v7 }
 0x251   : > { %v1068_v61 = vpop.f32.mrf.mxu0  ;;  %1564 = vst [vmem:[%s2637_s26 + $0x4a8] sm:$0xff] (%p1962_p4), %v1563_v54 }
 0x252   : > { %v1069_v21 = vadd.f32 %v1068_v61, %v955_v55  ;;  %v1439_v55 = vld [vmem:[%s2166_s17 + $0xb8] sm:$0xff] (%p1962_p4)  ;;  %v1453_v61 = vld [vmem:[%s2166_s17 + $0xf0] sm:$0xff] (%p1962_p4) }
 0x253   : > { %1440 = vst [vmem:[%s2637_s26 + $0xb8] sm:$0xff] (%p1962_p4), %v1439_v55 }
 0x254   : > { %v1123_v0 = vadd.f32 %v2511_v45, %v1069_v21  ;;  %v1455_v21 = vld [vmem:[%s2166_s17 + $0xf8] sm:$0xff] (%p1962_p4)  ;;  %1454 = vst [vmem:[%s2637_s26 + $0xf0] sm:$0xff] (%p1962_p4), %v1453_v61 }
 0x255   : > { %1456 = vst [vmem:[%s2637_s26 + $0xf8] sm:$0xff] (%p1962_p4), %v1455_v21  ;;  %v1565_v57 = vld [vmem:[%s2166_s17 + $0x2b0] sm:$0xff] (%p1962_p4) }
 0x256   : > { %1817 = vst [vmem:[%s2166_s17 + $0x2b8] sm:$0xff] %v1123_v0  ;;  %v1457_v0 = vld [vmem:[%s2166_s17 + $0x100] sm:$0xff] (%p1962_p4) }
 0x257   : > { %1458 = vst [vmem:[%s2637_s26 + $0x200] sm:$0xff] (%p1962_p4), %v1457_v0 }
 0x258   : > { %1566 = vst [vmem:[%s2637_s26 + $0x4b0] sm:$0xff] (%p1962_p4), %v1565_v57 }
 0x259   : > { %v1071_v27 = vpop.f32.mrf.mxu0 }
 0x25a   : > { %v1072_v37 = vadd.f32 %v1071_v27, %v958_v38  ;;  %v1449_v38 = vld [vmem:[%s2166_s17 + $0xe0] sm:$0xff] (%p1962_p4)  ;;  %v1461_v27 = vld [vmem:[%s2166_s17 + $0x110] sm:$0xff] (%p1962_p4) }
 0x25b   : > { %1450 = vst [vmem:[%s2637_s26 + $0xe0] sm:$0xff] (%p1962_p4), %v1449_v38 }
 0x25c   : > { %v1124_v10 = vadd.f32 %v2511_v45, %v1072_v37  ;;  %v1463_v37 = vld [vmem:[%s2166_s17 + $0x118] sm:$0xff] (%p1962_p4)  ;;  %1462 = vst [vmem:[%s2637_s26 + $0x210] sm:$0xff] (%p1962_p4), %v1461_v27 }
 0x25d   : > { %1464 = vst [vmem:[%s2637_s26 + $0x218] sm:$0xff] (%p1962_p4), %v1463_v37  ;;  %v1567_v55 = vld [vmem:[%s2166_s17 + $0x2b8] sm:$0xff] (%p1962_p4) }
 0x25e   : > { %1818 = vst [vmem:[%s2166_s17 + $0x2c0] sm:$0xff] %v1124_v10  ;;  %v1465_v10 = vld [vmem:[%s2166_s17 + $0x120] sm:$0xff] (%p1962_p4) }
 0x25f   : > { %1466 = vst [vmem:[%s2637_s26 + $0x220] sm:$0xff] (%p1962_p4), %v1465_v10 }
 0x260   : > { %1568 = vst [vmem:[%s2637_s26 + $0x4b8] sm:$0xff] (%p1962_p4), %v1567_v55 }
 0x261   : > { %v1074_v11 = vpop.f32.mrf.mxu0 }
 0x262   : > { %v1075_v14 = vadd.f32 %v1074_v11, %v961_v53  ;;  %v1459_v53 = vld [vmem:[%s2166_s17 + $0x108] sm:$0xff] (%p1962_p4)  ;;  %v1469_v11 = vld [vmem:[%s2166_s17 + $0x130] sm:$0xff] (%p1962_p4) }
 0x263   : > { %1460 = vst [vmem:[%s2637_s26 + $0x208] sm:$0xff] (%p1962_p4), %v1459_v53 }
 0x264   : > { %v1125_v42 = vadd.f32 %v2511_v45, %v1075_v14  ;;  %v1471_v14 = vld [vmem:[%s2166_s17 + $0x138] sm:$0xff] (%p1962_p4)  ;;  %1470 = vst [vmem:[%s2637_s26 + $0x230] sm:$0xff] (%p1962_p4), %v1469_v11 }
 0x265   : > { %1472 = vst [vmem:[%s2637_s26 + $0x238] sm:$0xff] (%p1962_p4), %v1471_v14  ;;  %v1569_v13 = vld [vmem:[%s2166_s17 + $0x2c0] sm:$0xff] (%p1962_p4) }
 0x266   : > { %1819 = vst [vmem:[%s2166_s17 + $0x2c8] sm:$0xff] %v1125_v42  ;;  %v1473_v42 = vld [vmem:[%s2166_s17 + $0x140] sm:$0xff] (%p1962_p4) }
 0x267   : > { %1474 = vst [vmem:[%s2637_s26 + $0x240] sm:$0xff] (%p1962_p4), %v1473_v42 }
 0x268   : > { %1570 = vst [vmem:[%s2637_s26 + $0x4c0] sm:$0xff] (%p1962_p4), %v1569_v13 }
 0x269   : > { %v1077_v34 = vpop.f32.mrf.mxu0 }
 0x26a   : > { %v1078_v39 = vadd.f32 %v1077_v34, %v964_v51  ;;  %v1467_v51 = vld [vmem:[%s2166_s17 + $0x128] sm:$0xff] (%p1962_p4) }
 0x26b   : > { %1468 = vst [vmem:[%s2637_s26 + $0x228] sm:$0xff] (%p1962_p4), %v1467_v51  ;;  %v1475_v34 = vld [vmem:[%s2166_s17 + $0x148] sm:$0xff] (%p1962_p4) }
 0x26c   : > { %v1126_v17 = vadd.f32 %v2511_v45, %v1078_v39  ;;  %v1479_v39 = vld [vmem:[%s2166_s17 + $0x158] sm:$0xff] (%p1962_p4)  ;;  %1476 = vst [vmem:[%s2637_s26 + $0x248] sm:$0xff] (%p1962_p4), %v1475_v34 }
 0x26d   : > { %1480 = vst [vmem:[%s2637_s26 + $0x258] sm:$0xff] (%p1962_p4), %v1479_v39  ;;  %v1571_v59 = vld [vmem:[%s2166_s17 + $0x2c8] sm:$0xff] (%p1962_p4) }
 0x26e   : > { %1820 = vst [vmem:[%s2166_s17 + $0x2d0] sm:$0xff] %v1126_v17  ;;  %v1481_v17 = vld [vmem:[%s2166_s17 + $0x160] sm:$0xff] (%p1962_p4) }
 0x26f   : > { %1482 = vst [vmem:[%s2637_s26 + $0x260] sm:$0xff] (%p1962_p4), %v1481_v17 }
 0x270   : > { %1572 = vst [vmem:[%s2637_s26 + $0x4c8] sm:$0xff] (%p1962_p4), %v1571_v59 }
 0x271   : > { %v1080_v56 = vpop.f32.mrf.mxu0 }
 0x272   : > { %v1081_v58 = vadd.f32 %v1080_v56, %v967_v41  ;;  %v1477_v41 = vld [vmem:[%s2166_s17 + $0x150] sm:$0xff] (%p1962_p4)  ;;  %v1483_v56 = vld [vmem:[%s2166_s17 + $0x168] sm:$0xff] (%p1962_p4) }
 0x273   : > { %1478 = vst [vmem:[%s2637_s26 + $0x250] sm:$0xff] (%p1962_p4), %v1477_v41 }
 0x274   : > { %v1127_v25 = vadd.f32 %v2511_v45, %v1081_v58  ;;  %v1485_v58 = vld [vmem:[%s2166_s17 + $0x170] sm:$0xff] (%p1962_p4)  ;;  %1484 = vst [vmem:[%s2637_s26 + $0x268] sm:$0xff] (%p1962_p4), %v1483_v56 }
 0x275   : > { %1486 = vst [vmem:[%s2637_s26 + $0x270] sm:$0xff] (%p1962_p4), %v1485_v58  ;;  %v1573_v60 = vld [vmem:[%s2166_s17 + $0x2d0] sm:$0xff] (%p1962_p4) }
 0x276   : > { %1821 = vst [vmem:[%s2166_s17 + $0x2d8] sm:$0xff] %v1127_v25  ;;  %v1489_v25 = vld [vmem:[%s2166_s17 + $0x180] sm:$0xff] (%p1962_p4) }
 0x277   : > { %1490 = vst [vmem:[%s2637_s26 + $0x280] sm:$0xff] (%p1962_p4), %v1489_v25 }
 0x278   : > { %1574 = vst [vmem:[%s2637_s26 + $0x4d0] sm:$0xff] (%p1962_p4), %v1573_v60 }
 0x279   : > { %v1083_v5 = vpop.f32.mrf.mxu0 }
 0x27a   : > { %v1084_v40 = vadd.f32 %v1083_v5, %v970_v19  ;;  %v1487_v19 = vld [vmem:[%s2166_s17 + $0x178] sm:$0xff] (%p1962_p4)  ;;  %v1491_v5 = vld [vmem:[%s2166_s17 + $0x188] sm:$0xff] (%p1962_p4) }
 0x27b   : > { %1488 = vst [vmem:[%s2637_s26 + $0x278] sm:$0xff] (%p1962_p4), %v1487_v19 }
 0x27c   : > { %v1128_v52 = vadd.f32 %v2511_v45, %v1084_v40  ;;  %v1493_v40 = vld [vmem:[%s2166_s17 + $0x190] sm:$0xff] (%p1962_p4)  ;;  %1492 = vst [vmem:[%s2637_s26 + $0x288] sm:$0xff] (%p1962_p4), %v1491_v5 }
 0x27d   : > { %1494 = vst [vmem:[%s2637_s26 + $0x290] sm:$0xff] (%p1962_p4), %v1493_v40  ;;  %v1575_v35 = vld [vmem:[%s2166_s17 + $0x2d8] sm:$0xff] (%p1962_p4) }
 0x27e   : > { %1822 = vst [vmem:[%s2166_s17 + $0x2e0] sm:$0xff] %v1128_v52  ;;  %v1495_v52 = vld [vmem:[%s2166_s17 + $0x198] sm:$0xff] (%p1962_p4) }
 0x27f   : > { %1496 = vst [vmem:[%s2637_s26 + $0x298] sm:$0xff] (%p1962_p4), %v1495_v52 }
 0x280   : > { %1576 = vst [vmem:[%s2637_s26 + $0x4d8] sm:$0xff] (%p1962_p4), %v1575_v35 }
 0x281   : > { %v1086_v62 = vpop.f32.mrf.mxu0 }
 0x282   : > { %v1087_v32 = vadd.f32 %v1086_v62, %v973_v26  ;;  %v1497_v26 = vld [vmem:[%s2166_s17 + $0x1a0] sm:$0xff] (%p1962_p4)  ;;  %v1499_v62 = vld [vmem:[%s2166_s17 + $0x1a8] sm:$0xff] (%p1962_p4) }
 0x283   : > { %1498 = vst [vmem:[%s2637_s26 + $0x2a0] sm:$0xff] (%p1962_p4), %v1497_v26 }
 0x284   : > { %v1129_v6 = vadd.f32 %v2511_v45, %v1087_v32  ;;  %v1501_v32 = vld [vmem:[%s2166_s17 + $0x1b0] sm:$0xff] (%p1962_p4)  ;;  %1500 = vst [vmem:[%s2637_s26 + $0x2a8] sm:$0xff] (%p1962_p4), %v1499_v62 }
 0x285   : > { %1502 = vst [vmem:[%s2637_s26 + $0x2b0] sm:$0xff] (%p1962_p4), %v1501_v32  ;;  %v1577_v38 = vld [vmem:[%s2166_s17 + $0x2e0] sm:$0xff] (%p1962_p4) }
 0x286   : > { %1823 = vst [vmem:[%s2166_s17 + $0x2e8] sm:$0xff] %v1129_v6  ;;  %v1503_v6 = vld [vmem:[%s2166_s17 + $0x1b8] sm:$0xff] (%p1962_p4) }
 0x287   : > { %1504 = vst [vmem:[%s2637_s26 + $0x2b8] sm:$0xff] (%p1962_p4), %v1503_v6 }
 0x288   : > { %1578 = vst [vmem:[%s2637_s26 + $0x4e0] sm:$0xff] (%p1962_p4), %v1577_v38 }
 0x289   : > { %v1089_v33 = vpop.f32.mrf.mxu0 }
 0x28a   : > { %v1090_v8 = vadd.f32 %v1089_v33, %v976_v9  ;;  %v1505_v9 = vld [vmem:[%s2166_s17 + $0x1c0] sm:$0xff] (%p1962_p4)  ;;  %v1507_v33 = vld [vmem:[%s2166_s17 + $0x1c8] sm:$0xff] (%p1962_p4) }
 0x28b   : > { %1506 = vst [vmem:[%s2637_s26 + $0x2c0] sm:$0xff] (%p1962_p4), %v1505_v9 }
 0x28c   : > { %v1130_v63 = vadd.f32 %v2511_v45, %v1090_v8  ;;  %v1509_v8 = vld [vmem:[%s2166_s17 + $0x1d0] sm:$0xff] (%p1962_p4)  ;;  %1508 = vst [vmem:[%s2637_s26 + $0x2c8] sm:$0xff] (%p1962_p4), %v1507_v33 }
 0x28d   : > { %1510 = vst [vmem:[%s2637_s26 + $0x2d0] sm:$0xff] (%p1962_p4), %v1509_v8  ;;  %v1579_v20 = vld [vmem:[%s2166_s17 + $0x2e8] sm:$0xff] (%p1962_p4) }
 0x28e   : > { %1824 = vst [vmem:[%s2166_s17 + $0x2f0] sm:$0xff] %v1130_v63  ;;  %v1511_v63 = vld [vmem:[%s2166_s17 + $0x1d8] sm:$0xff] (%p1962_p4) }
 0x28f   : > { %1512 = vst [vmem:[%s2637_s26 + $0x2d8] sm:$0xff] (%p1962_p4), %v1511_v63 }
 0x290   : > { %1580 = vst [vmem:[%s2637_s26 + $0x4e8] sm:$0xff] (%p1962_p4), %v1579_v20 }
 0x295   : > { %v1581_v61 = vld [vmem:[%s2166_s17 + $0x2f0] sm:$0xff] (%p1962_p4) }
 0x296   : > { %1582 = vst [vmem:[%s2637_s26 + $0x4f0] sm:$0xff] (%p1962_p4), %v1581_v61 }
 0x297   : > { %v1092_v12 = vpop.f32.mrf.mxu2 }
 0x298   : > { %v1093_v16 = vadd.f32 %v1092_v12, %v979_v1  ;;  %1171 = sbr.rel (!%p1962_p4) target bundleno = 677 (0x2a5), region = 48  ;;  %v1513_v1 = vld [vmem:[%s2166_s17 + $0x1e0] sm:$0xff] (%p1962_p4)  ;;  %v1515_v12 = vld [vmem:[%s2166_s17 + $0x1e8] sm:$0xff] (%p1962_p4) }
 0x299   : > { %1514 = vst [vmem:[%s2637_s26 + $0x2e0] sm:$0xff] (%p1962_p4), %v1513_v1 }
 0x29a   : > { %v1131_v44 = vadd.f32 %v2511_v45, %v1093_v16  ;;  %v1397_v45 = vld [vmem:[%s2166_s17 + $0x10] sm:$0xff] (%p1962_p4)  ;;  %1516 = vst [vmem:[%s2637_s26 + $0x2e8] sm:$0xff] (%p1962_p4), %v1515_v12 }
 0x29b   : > { %1398 = vst [vmem:[%s2637_s26 + $0x10] sm:$0xff] (%p1962_p4), %v1397_v45  ;;  %v1517_v16 = vld [vmem:[%s2166_s17 + $0x1f0] sm:$0xff] (%p1962_p4) }
 0x29c   : > { %1825 = vst [vmem:[%s2166_s17 + $0x2f8] sm:$0xff] %v1131_v44  ;;  %v1519_v44 = vld [vmem:[%s2166_s17 + $0x1f8] sm:$0xff] (%p1962_p4)  ;;  %v1525_v45 = vld [vmem:[%s2166_s17 + $0x210] sm:$0xff] (%p1962_p4) }
 0x29d   : > { %1518 = vst [vmem:[%s2637_s26 + $0x2f0] sm:$0xff] %v1517_v16 }
 0x29e   : > { %1520 = vst [vmem:[%s2637_s26 + $0x2f8] sm:$0xff] %v1519_v44 }
 0x29f   : > { %1526 = vst [vmem:[%s2637_s26 + $0x410] sm:$0xff] %v1525_v45 }
 0x2a3   : > { %v1583_v21 = vld [vmem:[%s2166_s17 + $0x2f8] sm:$0xff] }
 0x2a4   : > { %1584 = vst [vmem:[%s2637_s26 + $0x4f8] sm:$0xff] %v1583_v21 }
 0x2a5 PF: > { %p13_p8 = scmp.ge.s32.totalorder %s1952_s25, 4   ;;  %s2847_s21 = smov %s1896_s22 }
 0x2a6   : > { %s2848_s22 = smov %s1960_s28  ;;  %s2849_s23 = smov %s1952_s25 }
 0x2a7   :  { %15 = sbr.rel (!%p13_p8) target bundleno = 2 (0x2), region = 117 }

</bundles_post_ra>
